<compile_context>
chip_gen: v6e
topology: v6e:2x2x1
jax: 0.10.0
libtpu: 0.0.40
codegen_flags: <defaults>
</compile_context>

<pallas_src>
from functools import partial

import numpy as np
import jax
import jax.numpy as jnp
from jax.experimental import pallas as pl
from jax.experimental.pallas import tpu as pltpu

HIDDEN = 512


# ------------------------------- Pallas kernel -------------------------------

def center_dynamics_kernel(x_ref, w1_ref, b_ref, w2_ref, w3_ref, w4_ref,
                           out_ref, *, pad_out):
    # Packed biases: rows 0..2 are b1/b2/b3 (512 lanes); row 3 holds b4 in
    # lanes 0..pad_out-1 (zero beyond out_dim, matching the padded w4).
    b1 = b_ref[0:1, :]
    b2 = b_ref[1:2, :]
    b3 = b_ref[2:3, :]
    b4 = b_ref[3:4, 0:pad_out]

    # Layer 1: lane-dense K=256 bf16 MXU matmul (zero-padded action folded in).
    h = jnp.maximum(
        jnp.dot(x_ref[...], w1_ref[...], preferred_element_type=jnp.float32)
        + b1, 0.0)
    # dropout (eval mode) = identity
    h = jnp.maximum(
        jnp.dot(h.astype(jnp.bfloat16), w2_ref[...],
                preferred_element_type=jnp.float32) + b2, 0.0)
    h = jnp.maximum(
        jnp.dot(h.astype(jnp.bfloat16), w3_ref[...],
                preferred_element_type=jnp.float32) + b3, 0.0)
    out = jnp.dot(h.astype(jnp.bfloat16), w4_ref[...],
                  preferred_element_type=jnp.float32) + b4
    out_ref[...] = out.astype(out_ref.dtype)          # bf16 lane-dense writeback


# ------------------------------ glue / wrapper --------------------------------

def center_dynamics_forward(center, action, p):
    B = center.shape[0]
    out_dim = p['fc4_w'].shape[0]                      # 192
    act_dim = action.shape[-1]
    in_dim = out_dim + act_dim                         # 197
    K = ((in_dim + 255) // 256) * 256                  # 256: one full MXU K-pass
    pad_out = ((out_dim + 127) // 128) * 128           # 256: lane-dense head

    # torch.reshape(center, (B, output_dim)) + concat(action), padded to K=256.
    c = jnp.reshape(center, (B, out_dim)).astype(jnp.float32)
    x = jnp.concatenate([c, action.astype(jnp.float32)], axis=-1)   # (B, 197)
    x = jnp.pad(x, ((0, 0), (0, K - in_dim))).astype(jnp.bfloat16)  # (B, 256)

    # Trace-time weight prep: transpose to (in, out), pad, cast to bf16.
    w1 = jnp.pad(p['fc1_w'].T, ((0, K - in_dim), (0, 0))).astype(jnp.bfloat16)
    w2 = p['fc2_w'].T.astype(jnp.bfloat16)
    w3 = p['fc3_w'].T.astype(jnp.bfloat16)
    w4 = jnp.pad(p['fc4_w'].T,
                 ((0, 0), (0, pad_out - out_dim))).astype(jnp.bfloat16)
    # Pack all biases into one (4, HIDDEN) f32 array (one DMA instead of four).
    b_packed = jnp.stack([
        p['fc1_b'], p['fc2_b'], p['fc3_b'],
        jnp.pad(p['fc4_b'], (0, HIDDEN - out_dim)),
    ]).astype(jnp.float32)                             # (4, 512)

    # Batch tiling: single block up to 512 rows, else 512-row tiles.
    if B <= 512:
        bt, Bp = B, B
    else:
        bt = 512
        Bp = pl.cdiv(B, bt) * bt
        if Bp != B:
            x = jnp.pad(x, ((0, Bp - B), (0, 0)))
    grid = (Bp // bt,)
    # Megacore sharding only when per-core batch work clearly exceeds the
    # duplicated weight DMA (v7x has 2 TCs, each re-DMAs constant-index blocks).
    semantics = ("parallel",) if B >= 2048 else ("arbitrary",)

    args = (x, w1, b_packed, w2, w3, w4)
    flops = 2 * Bp * (K * HIDDEN + HIDDEN * HIDDEN + HIDDEN * HIDDEN
                      + HIDDEN * pad_out)
    bytes_accessed = (sum(int(np.prod(a.shape)) * a.dtype.itemsize for a in args)
                      + Bp * pad_out * 2)

    out = pl.pallas_call(
        partial(center_dynamics_kernel, pad_out=pad_out),
        out_shape=jax.ShapeDtypeStruct((Bp, pad_out), jnp.bfloat16),
        grid=grid,
        in_specs=[
            pl.BlockSpec((bt, K), lambda i: (i, 0)),             # x (center|action|0)
            pl.BlockSpec((K, HIDDEN), lambda i: (0, 0)),         # w1 (K-padded)
            pl.BlockSpec((4, HIDDEN), lambda i: (0, 0)),         # packed biases
            pl.BlockSpec((HIDDEN, HIDDEN), lambda i: (0, 0)),    # w2
            pl.BlockSpec((HIDDEN, HIDDEN), lambda i: (0, 0)),    # w3
            pl.BlockSpec((HIDDEN, pad_out), lambda i: (0, 0)),   # w4 (lane-padded)
        ],
        out_specs=pl.BlockSpec((bt, pad_out), lambda i: (i, 0)),
        compiler_params=pltpu.CompilerParams(dimension_semantics=semantics),
        cost_estimate=pl.CostEstimate(flops=flops, transcendentals=0,
                                      bytes_accessed=bytes_accessed),
    )(*args)

    out = out[:B, :out_dim].astype(jnp.float32)
    return jnp.reshape(out, (B, 64, 3))


# --------------------------- deterministic params -----------------------------

def init_params(key, output_dim=192, action_dim=5, hidden=HIDDEN):
    input_dim = output_dim + action_dim
    ks = jax.random.split(key, 8)

    def w(k, out_c, in_c):
        return jax.random.normal(k, (out_c, in_c), jnp.float32) / jnp.sqrt(float(in_c))

    def b(k, c):
        return 0.1 * jax.random.normal(k, (c,), jnp.float32)

    return {
        'fc1_w': w(ks[0], hidden, input_dim),  'fc1_b': b(ks[1], hidden),
        'fc2_w': w(ks[2], hidden, hidden),     'fc2_b': b(ks[3], hidden),
        'fc3_w': w(ks[4], hidden, hidden),     'fc3_b': b(ks[5], hidden),
        'fc4_w': w(ks[6], output_dim, hidden), 'fc4_b': b(ks[7], output_dim),
    }


# ----------------------------- pure-JAX reference ------------------------------

def reference_forward(center, action, p):
    B = center.shape[0]
    out_dim = p['fc4_w'].shape[0]
    x = jnp.reshape(center, (B, out_dim))
    x = jnp.concatenate([x, action], axis=-1)
    x = jnp.maximum(x @ p['fc1_w'].T + p['fc1_b'], 0.0)   # dropout = identity (eval)
    x = jnp.maximum(x @ p['fc2_w'].T + p['fc2_b'], 0.0)   # dropout = identity (eval)
    x = jnp.maximum(x @ p['fc3_w'].T + p['fc3_b'], 0.0)   # dropout = identity (eval)
    x = x @ p['fc4_w'].T + p['fc4_b']
    return jnp.reshape(x, (B, 64, 3))


# ----------------------------------- main --------------------------------------

if __name__ == "__main__":
    key = jax.random.PRNGKey(0)
    kp, kc, ka = jax.random.split(key, 3)

    B, action_dim = 2, 5                     # centers: 64 points x 3 coords
    params = init_params(kp, output_dim=192, action_dim=action_dim)
    centers = jax.random.normal(kc, (B, 64, 3), jnp.float32)
    action = jax.random.normal(ka, (B, action_dim), jnp.float32)

    out = center_dynamics_forward(centers, action, params)
    out = jax.block_until_ready(out)
    assert out.shape == (B, 64, 3)

    ref = reference_forward(centers, action, params)
    # Tolerance accounts for bf16 MXU operands (f32 accumulation) across four
    # layers plus the bf16 output writeback.
    np.testing.assert_allclose(np.asarray(out), np.asarray(ref),
                               rtol=3e-2, atol=3e-2)
    print("KERNEL_OK")
</pallas_src>

<mosaic_0001>
module attributes {stable_mosaic.version = 11 : i64} {
  func.func @center_dynamics_kernel(%arg0: i32, %arg1: memref<2x256xbf16, #tpu.memory_space<vmem>>, %arg2: memref<256x512xbf16, #tpu.memory_space<vmem>>, %arg3: memref<4x512xf32, #tpu.memory_space<vmem>>, %arg4: memref<512x512xbf16, #tpu.memory_space<vmem>>, %arg5: memref<512x512xbf16, #tpu.memory_space<vmem>>, %arg6: memref<512x256xbf16, #tpu.memory_space<vmem>>, %arg7: memref<2x256xbf16, #tpu.memory_space<vmem>>) attributes {dimension_semantics = [#tpu.dimension_semantics<arbitrary>], iteration_bounds = array<i64: 1>, scalar_prefetch = 0 : i64, scratch_operands = 0 : i64, tpu.core_type = #tpu.core_type<tc>, window_params = [{transform_indices = @transform_0, window_bounds = array<i64: 2, 256>}, {pipeline_mode = #tpu.pipeline_mode<synchronous>, transform_indices = @transform_1, window_bounds = array<i64: 256, 512>}, {pipeline_mode = #tpu.pipeline_mode<synchronous>, transform_indices = @transform_2, window_bounds = array<i64: 4, 512>}, {pipeline_mode = #tpu.pipeline_mode<synchronous>, transform_indices = @transform_3, window_bounds = array<i64: 512, 512>}, {pipeline_mode = #tpu.pipeline_mode<synchronous>, transform_indices = @transform_4, window_bounds = array<i64: 512, 512>}, {pipeline_mode = #tpu.pipeline_mode<synchronous>, transform_indices = @transform_5, window_bounds = array<i64: 512, 256>}, {transform_indices = @transform_6, window_bounds = array<i64: 2, 256>}]} {
    %c0 = arith.constant 0 : index
    %c0_0 = arith.constant 0 : index
    %0 = vector.load %arg3[%c0, %c0_0] : memref<4x512xf32, #tpu.memory_space<vmem>>, vector<1x512xf32>
    %c1 = arith.constant 1 : index
    %c0_1 = arith.constant 0 : index
    %1 = vector.load %arg3[%c1, %c0_1] : memref<4x512xf32, #tpu.memory_space<vmem>>, vector<1x512xf32>
    %c2 = arith.constant 2 : index
    %c0_2 = arith.constant 0 : index
    %2 = vector.load %arg3[%c2, %c0_2] : memref<4x512xf32, #tpu.memory_space<vmem>>, vector<1x512xf32>
    %c3 = arith.constant 3 : index
    %c0_3 = arith.constant 0 : index
    %3 = vector.load %arg3[%c3, %c0_3] : memref<4x512xf32, #tpu.memory_space<vmem>>, vector<1x256xf32>
    %c0_4 = arith.constant 0 : index
    %c0_5 = arith.constant 0 : index
    %4 = vector.load %arg1[%c0_4, %c0_5] : memref<2x256xbf16, #tpu.memory_space<vmem>>, vector<2x256xbf16>
    %c0_6 = arith.constant 0 : index
    %c0_7 = arith.constant 0 : index
    %5 = vector.load %arg2[%c0_6, %c0_7] : memref<256x512xbf16, #tpu.memory_space<vmem>>, vector<256x512xbf16>
    %cst = arith.constant dense<0.000000e+00> : vector<2x512xf32>
    %6 = tpu.matmul %4, %5, %cst {dimension_numbers = #tpu.dot_dimension_numbers<[1], [0], [0], [1], [0, 0, 1, 1], [], []>} : vector<2x256xbf16>, vector<256x512xbf16>, vector<2x512xf32> -> vector<2x512xf32>
    %7 = vector.broadcast %0 : vector<1x512xf32> to vector<2x512xf32>
    %8 = arith.addf %6, %7 : vector<2x512xf32>
    %cst_8 = arith.constant 0.000000e+00 : f32
    %9 = vector.broadcast %cst_8 : f32 to vector<2x512xf32>
    %10 = arith.maximumf %8, %9 : vector<2x512xf32>
    %11 = arith.truncf %10 : vector<2x512xf32> to vector<2x512xbf16>
    %c0_9 = arith.constant 0 : index
    %c0_10 = arith.constant 0 : index
    %12 = vector.load %arg4[%c0_9, %c0_10] : memref<512x512xbf16, #tpu.memory_space<vmem>>, vector<512x512xbf16>
    %cst_11 = arith.constant dense<0.000000e+00> : vector<2x512xf32>
    %13 = tpu.matmul %11, %12, %cst_11 {dimension_numbers = #tpu.dot_dimension_numbers<[1], [0], [0], [1], [0, 0, 1, 1], [], []>} : vector<2x512xbf16>, vector<512x512xbf16>, vector<2x512xf32> -> vector<2x512xf32>
    %14 = vector.broadcast %1 : vector<1x512xf32> to vector<2x512xf32>
    %15 = arith.addf %13, %14 : vector<2x512xf32>
    %cst_12 = arith.constant 0.000000e+00 : f32
    %16 = vector.broadcast %cst_12 : f32 to vector<2x512xf32>
    %17 = arith.maximumf %15, %16 : vector<2x512xf32>
    %18 = arith.truncf %17 : vector<2x512xf32> to vector<2x512xbf16>
    %c0_13 = arith.constant 0 : index
    %c0_14 = arith.constant 0 : index
    %19 = vector.load %arg5[%c0_13, %c0_14] : memref<512x512xbf16, #tpu.memory_space<vmem>>, vector<512x512xbf16>
    %cst_15 = arith.constant dense<0.000000e+00> : vector<2x512xf32>
    %20 = tpu.matmul %18, %19, %cst_15 {dimension_numbers = #tpu.dot_dimension_numbers<[1], [0], [0], [1], [0, 0, 1, 1], [], []>} : vector<2x512xbf16>, vector<512x512xbf16>, vector<2x512xf32> -> vector<2x512xf32>
    %21 = vector.broadcast %2 : vector<1x512xf32> to vector<2x512xf32>
    %22 = arith.addf %20, %21 : vector<2x512xf32>
    %cst_16 = arith.constant 0.000000e+00 : f32
    %23 = vector.broadcast %cst_16 : f32 to vector<2x512xf32>
    %24 = arith.maximumf %22, %23 : vector<2x512xf32>
    %25 = arith.truncf %24 : vector<2x512xf32> to vector<2x512xbf16>
    %c0_17 = arith.constant 0 : index
    %c0_18 = arith.constant 0 : index
    %26 = vector.load %arg6[%c0_17, %c0_18] : memref<512x256xbf16, #tpu.memory_space<vmem>>, vector<512x256xbf16>
    %cst_19 = arith.constant dense<0.000000e+00> : vector<2x256xf32>
    %27 = tpu.matmul %25, %26, %cst_19 {dimension_numbers = #tpu.dot_dimension_numbers<[1], [0], [0], [1], [0, 0, 1, 1], [], []>} : vector<2x512xbf16>, vector<512x256xbf16>, vector<2x256xf32> -> vector<2x256xf32>
    %28 = vector.broadcast %3 : vector<1x256xf32> to vector<2x256xf32>
    %29 = arith.addf %27, %28 : vector<2x256xf32>
    %30 = arith.truncf %29 : vector<2x256xf32> to vector<2x256xbf16>
    %c0_20 = arith.constant 0 : index
    %c0_21 = arith.constant 0 : index
    %31 = vector.load %arg7[%c0_20, %c0_21] : memref<2x256xbf16, #tpu.memory_space<vmem>>, vector<2x256xbf16>
    tpu.vector_store %arg7[%c0_20, %c0_21], %30 {strides = array<i32>} : memref<2x256xbf16, #tpu.memory_space<vmem>>, vector<2x256xbf16>,
    return
  }
  func.func @transform_0(%arg0: i32) -> (i32, i32) {
    %c0_i32 = arith.constant 0 : i32
    %c0_i32_0 = arith.constant 0 : i32
    return %arg0, %c0_i32 : i32, i32
  }
  func.func @transform_1(%arg0: i32) -> (i32, i32) {
    %c0_i32 = arith.constant 0 : i32
    %c0_i32_0 = arith.constant 0 : i32
    %c0_i32_1 = arith.constant 0 : i32
    return %c0_i32, %c0_i32_0 : i32, i32
  }
  func.func @transform_2(%arg0: i32) -> (i32, i32) {
    %c0_i32 = arith.constant 0 : i32
    %c0_i32_0 = arith.constant 0 : i32
    %c0_i32_1 = arith.constant 0 : i32
    return %c0_i32, %c0_i32_0 : i32, i32
  }
  func.func @transform_3(%arg0: i32) -> (i32, i32) {
    %c0_i32 = arith.constant 0 : i32
    %c0_i32_0 = arith.constant 0 : i32
    %c0_i32_1 = arith.constant 0 : i32
    return %c0_i32, %c0_i32_0 : i32, i32
  }
  func.func @transform_4(%arg0: i32) -> (i32, i32) {
    %c0_i32 = arith.constant 0 : i32
    %c0_i32_0 = arith.constant 0 : i32
    %c0_i32_1 = arith.constant 0 : i32
    return %c0_i32, %c0_i32_0 : i32, i32
  }
  func.func @transform_5(%arg0: i32) -> (i32, i32) {
    %c0_i32 = arith.constant 0 : i32
    %c0_i32_0 = arith.constant 0 : i32
    %c0_i32_1 = arith.constant 0 : i32
    return %c0_i32, %c0_i32_0 : i32, i32
  }
  func.func @transform_6(%arg0: i32) -> (i32, i32) {
    %c0_i32 = arith.constant 0 : i32
    %c0_i32_0 = arith.constant 0 : i32
    return %arg0, %c0_i32 : i32, i32
  }
}

</mosaic_0001>

<bundles_post_ra>
// kernel: tpu_custom_call.1
= control target key start
LH: loop header
LB: loop body
LE: loop exit
PB: predicated region body
PF: predicated region fallthrough
CT: control target
= control target key end

     0   :  { %11 = vsyncpa [#allocation3], 0  ;;  %s4326_s0 = inlined_call_operand.hbm [shape: bf16[2,256], index: 0, kind: input, shape index: {}]   ;;  %s4327_s1 = inlined_call_operand.hbm [shape: bf16[256,512], index: 1, kind: input, shape index: {}]   ;;  %s4328_s2 = inlined_call_operand.hbm [shape: f32[4,512], index: 2, kind: input, shape index: {}]   ;;  %s4329_s3 = inlined_call_operand.hbm [shape: bf16[512,512], index: 3, kind: input, shape index: {}]   ;;  %s4330_s4 = inlined_call_operand.hbm [shape: bf16[512,512], index: 4, kind: input, shape index: {}]   ;;  %s4331_s5 = inlined_call_operand.hbm [shape: bf16[512,256], index: 5, kind: input, shape index: {}]   ;;  %s4332_s6 = inlined_call_operand.hbm [shape: bf16[2,256], index: 6, kind: output, shape index: {}]  }
   0x1   :  { %12 = vsyncpa [#allocation6], 0 }
   0x2   :  { %13 = vsyncpa [#allocation9], 0 }
   0x3   :  { %14 = vsyncpa [#allocation12], 0 }
   0x4   :  { %15 = vsyncpa [#allocation4], 0  ;;  %s4193_s21 = smov [#allocation5]  }
   0x5   :  { %s31_s22 = sshll.u32 %s4193_s21, 4  ;;  %s32_s22 = int_to_ptr.vmem [resolvable:$true] %s31_s22 }
   0x6   :  { %s4051_s23 = scalar_lea.vmem %s32_s22, 8192  ;;  %p4056_p1 = scmp.lt.s32.totalorder %s32_s22, %s32_s22 }
   0x7   :  { %p4052_p0 = scmp.ne.s32.totalorder %s32_s22, %s4051_s23  ;;  %p4057_p2 = scmp.lt.s32.totalorder %s4051_s23, %s4051_s23 }
   0x9   :  { %p4058_p3 = por %p4057_p2, %p4056_p1 }
   0xb   :  { %p4059_p4 = pnand %p4058_p3, %p4052_p0 }
   0xd   :  { %4062 = shalt.err (!%p4059_p4)
}
   0xe   :  { %s4194_s24 = smov 256   ;;  %s4195_s25 = smov 16  }
   0xf   :  { %37 = dma.hbm_to_vmem [thread:$0]  %s4327_s1, 8192, %s32_s22, [#allocation6], %s4194_s24, %s4194_s24, %s4195_s25  }
  0x10   :  { %s4196_s28 = smov [#allocation8]   ;;  %s4197_s30 = smov [#allocation2]  }
  0x11   :  { %s53_s29 = sshll.u32 %s4196_s28, 4  ;;  %s22_s7 = sshll.u32 %s4197_s30, 4  ;;  %s54_s29 = int_to_ptr.vmem [resolvable:$true] %s53_s29  ;;  %s23_s7 = int_to_ptr.vmem [resolvable:$true] %s22_s7 }
  0x12   :  { %s4071_s8 = scalar_lea.vmem %s54_s29, 16384  ;;  %p4076_p6 = scmp.lt.s32.totalorder %s54_s29, %s54_s29 }
  0x13   :  { %p4072_p5 = scmp.ne.s32.totalorder %s54_s29, %s4071_s8  ;;  %p4077_p7 = scmp.lt.s32.totalorder %s4071_s8, %s4071_s8 }
  0x15   :  { %p4078_p8 = por %p4077_p7, %p4076_p6 }
  0x17   :  { %p4079_p9 = pnand %p4078_p8, %p4072_p5 }
  0x19   :  { %4082 = shalt.err (!%p4079_p9)
}
  0x1a   :  { %59 = dma.hbm_to_vmem [thread:$0]  %s4329_s3, 16384, %s54_s29, [#allocation9], %s4194_s24, %s4194_s24, %s4195_s25  }
  0x1b   :  { %s4091_s1 = scalar_lea.vmem %s23_s7, 32  ;;  %p4096_p11 = scmp.lt.s32.totalorder %s23_s7, %s23_s7 }
  0x1c   :  { %p4092_p10 = scmp.ne.s32.totalorder %s23_s7, %s4091_s1  ;;  %p4097_p12 = scmp.lt.s32.totalorder %s4091_s1, %s4091_s1 }
  0x1e   :  { %p4098_p13 = por %p4097_p12, %p4096_p11 }
  0x20   :  { %p4099_p0 = pnand %p4098_p13, %p4092_p10 }
  0x22   :  { %4102 = shalt.err (!%p4099_p0)
}
  0x23   :  { %25 = dma.hbm_to_vmem [thread:$0]  %s4326_s0, 32, %s23_s7, [#allocation3]  }
  0x24   :  { %s4198_s13 = smov [#allocation7]   ;;  %s4199_s15 = smov [#allocation10]  }
  0x25   :  { %s44_s14 = sshll.u32 %s4198_s13, 4  ;;  %s65_s16 = sshll.u32 %s4199_s15, 4  ;;  %s45_s14 = int_to_ptr.vmem [resolvable:$true] %s44_s14  ;;  %s66_s16 = int_to_ptr.vmem [resolvable:$true] %s65_s16 }
  0x26   :  { %s4111_s17 = scalar_lea.vmem %s45_s14, 256  ;;  %p4116_p2 = scmp.lt.s32.totalorder %s45_s14, %s45_s14 }
  0x27   :  { %p4112_p1 = scmp.ne.s32.totalorder %s45_s14, %s4111_s17  ;;  %p4117_p3 = scmp.lt.s32.totalorder %s4111_s17, %s4111_s17 }
  0x29   :  { %p4118_p4 = por %p4117_p3, %p4116_p2 }
  0x2b   :  { %p4119_p5 = pnand %p4118_p4, %p4112_p1 }
  0x2d   :  { %4122 = shalt.err (!%p4119_p5)
}
  0x2e   :  { %47 = dma.hbm_to_vmem [thread:$0]  %s4328_s2, 256, %s45_s14, [#allocation6]  }
  0x2f   :  { %s4131_s19 = scalar_lea.vmem %s66_s16, 16384  ;;  %p4136_p7 = scmp.lt.s32.totalorder %s66_s16, %s66_s16 }
  0x30   :  { %p4132_p6 = scmp.ne.s32.totalorder %s66_s16, %s4131_s19  ;;  %p4137_p8 = scmp.lt.s32.totalorder %s4131_s19, %s4131_s19 }
  0x32   :  { %p4138_p9 = por %p4137_p8, %p4136_p7 }
  0x34   :  { %p4139_p10 = pnand %p4138_p9, %p4132_p6 }
  0x36   :  { %4142 = shalt.err (!%p4139_p10)
}
  0x37   :  { %71 = dma.hbm_to_vmem [thread:$0]  %s4330_s4, 16384, %s66_s16, [#allocation9], %s4194_s24, %s4194_s24, %s4195_s25  }
  0x38   :  { %s4200_s21 = smov [#allocation11]  }
  0x39   :  { %s77_s22 = sshll.u32 %s4200_s21, 4  ;;  %s78_s22 = int_to_ptr.vmem [resolvable:$true] %s77_s22 }
  0x3a   :  { %s4151_s23 = scalar_lea.vmem %s78_s22, 8192  ;;  %p4156_p12 = scmp.lt.s32.totalorder %s78_s22, %s78_s22 }
  0x3b   :  { %p4152_p11 = scmp.ne.s32.totalorder %s78_s22, %s4151_s23  ;;  %p4157_p13 = scmp.lt.s32.totalorder %s4151_s23, %s4151_s23 }
  0x3d   :  { %p4158_p0 = por %p4157_p13, %p4156_p12 }
  0x3f   :  { %p4159_p1 = pnand %p4158_p0, %p4152_p11 }
  0x41   :  { %4162 = shalt.err (!%p4159_p1)
}
  0x42   :  { %s4201_s2 = smov 128   ;;  %s4202_s26 = smov 8  }
  0x43   :  { %83 = dma.hbm_to_vmem [thread:$0]  %s4331_s5, 8192, %s78_s22, [#allocation12], %s4201_s2, %s4201_s2, %s4202_s26  }
  0x44   :  { %4183 = dma.done.wait [#allocation3], 32  }
  0x45   :  { %4184 = vsyncadd [#allocation3], 4294967264 }
  0x46   :  { %4185 = dma.done.wait [#allocation6], 8448  }
  0x47   :  { %4186 = vsyncadd [#allocation6], 4294958848 }
  0x48   :  { %4187 = dma.done.wait [#allocation9], 32768  }
  0x49   :  { %4188 = vsyncadd [#allocation9], 4294934528 }
  0x4a   :  { %4189 = dma.done.wait [#allocation12], 8192  }
  0x4b   :  { %4190 = vsyncadd [#allocation12], 4294959104  ;;  %v3467_v0 = vld [vmem:[#allocation5 + $0xe4] ss:$16 sps:$4 sm:$0xff]   ;;  %v3469_v1 = vld [vmem:[#allocation5 + $0xec] ss:$16 sps:$4 sm:$0xff]   ;;  %v175_v38 = vlaneseq }
  0x4c   :  { %540 = vmatprep.subr.bf16.mxu0 %v3467_v0  ;;  %v3471_v2 = vld [vmem:[#allocation5 + $0xe0] ss:$16 sps:$4 sm:$0xff]   ;;  %v3472_v3 = vld [vmem:[#allocation5 + $0xe8] ss:$16 sps:$4 sm:$0xff]   ;;  %581 = vmatprep.subr.bf16.mxu1 %v3469_v1  ;;  %v3473_v4 = vld [vmem:[#allocation5 + $0xc4] ss:$16 sps:$4 sm:$0xff]  }
  0x4d   :  { %541 = vmatpush1.bf16.msra.mxu0 %v3471_v2  ;;  %582 = vmatpush1.bf16.msra.mxu1 %v3472_v3  ;;  %v3475_v5 = vld [vmem:[#allocation5 + $0xcc] ss:$16 sps:$4 sm:$0xff]   ;;  %v3477_v6 = vld [vmem:[#allocation5 + $0xc0] ss:$16 sps:$4 sm:$0xff]   ;;  %v3478_v7 = vld [vmem:[#allocation5 + $0xc8] ss:$16 sps:$4 sm:$0xff]  }
  0x4e   :  { %542 = vmatprep.subr.bf16.mxu0 %v3473_v4  ;;  %583 = vmatprep.subr.bf16.mxu1 %v3475_v5  ;;  %v3479_v8 = vld [vmem:[#allocation5 + $0xa4] ss:$16 sps:$4 sm:$0xff]   ;;  %v3481_v9 = vld [vmem:[#allocation5 + $0xac] ss:$16 sps:$4 sm:$0xff]   ;;  %v3483_v10 = vld [vmem:[#allocation5 + $0xa0] ss:$16 sps:$4 sm:$0xff]  }
  0x4f   :  { %v3484_v11 = vld [vmem:[#allocation5 + $0xa8] ss:$16 sps:$4 sm:$0xff]   ;;  %v3485_v12 = vld [vmem:[#allocation5 + $0x84] ss:$16 sps:$4 sm:$0xff]   ;;  %v3487_v13 = vld [vmem:[#allocation5 + $0x8c] ss:$16 sps:$4 sm:$0xff]  }
  0x50   :  { %v3489_v14 = vld [vmem:[#allocation5 + $0x80] ss:$16 sps:$4 sm:$0xff]   ;;  %v3490_v15 = vld [vmem:[#allocation5 + $0x88] ss:$16 sps:$4 sm:$0xff]   ;;  %v3491_v16 = vld [vmem:[#allocation5 + $0x64] ss:$16 sps:$4 sm:$0xff]  }
  0x51   :  { %543 = vmatpush1.bf16.msra.mxu0 %v3477_v6  ;;  %584 = vmatpush1.bf16.msra.mxu1 %v3478_v7  ;;  %v3493_v17 = vld [vmem:[#allocation5 + $0x6c] ss:$16 sps:$4 sm:$0xff]   ;;  %v3495_v18 = vld [vmem:[#allocation5 + $0x60] ss:$16 sps:$4 sm:$0xff]   ;;  %v3496_v19 = vld [vmem:[#allocation5 + $0x68] ss:$16 sps:$4 sm:$0xff]  }
  0x52   :  { %544 = vmatprep.subr.bf16.mxu0 %v3479_v8  ;;  %585 = vmatprep.subr.bf16.mxu1 %v3481_v9  ;;  %v3497_v20 = vld [vmem:[#allocation5 + $0x44] ss:$16 sps:$4 sm:$0xff]   ;;  %v3499_v21 = vld [vmem:[#allocation5 + $0x4c] ss:$16 sps:$4 sm:$0xff]   ;;  %v3501_v22 = vld [vmem:[#allocation5 + $0x40] ss:$16 sps:$4 sm:$0xff]  }
  0x53   :  { %v3502_v23 = vld [vmem:[#allocation5 + $0x48] ss:$16 sps:$4 sm:$0xff]   ;;  %v3503_v24 = vld [vmem:[#allocation5 + $0x24] ss:$16 sps:$4 sm:$0xff]   ;;  %v3505_v25 = vld [vmem:[#allocation5 + $0x2c] ss:$16 sps:$4 sm:$0xff]  }
  0x54   :  { %v3507_v26 = vld [vmem:[#allocation5 + $0x20] ss:$16 sps:$4 sm:$0xff]   ;;  %v3508_v27 = vld [vmem:[#allocation5 + $0x28] ss:$16 sps:$4 sm:$0xff]   ;;  %v3509_v28 = vld [vmem:[#allocation5 + $0x4] ss:$16 sps:$4 sm:$0xff]  }
  0x55   :  { %545 = vmatpush1.bf16.msra.mxu0 %v3483_v10  ;;  %586 = vmatpush1.bf16.msra.mxu1 %v3484_v11  ;;  %v3511_v29 = vld [vmem:[#allocation5 + $0xc] ss:$16 sps:$4 sm:$0xff]   ;;  %v3513_v30 = vld [vmem:[#allocation5] ss:$16 sps:$4 sm:$0xff]   ;;  %v3514_v31 = vld [vmem:[#allocation5 + $0x8] ss:$16 sps:$4 sm:$0xff]  }
  0x56   :  { %546 = vmatprep.subr.bf16.mxu0 %v3485_v12  ;;  %587 = vmatprep.subr.bf16.mxu1 %v3487_v13  ;;  %v3515_v32 = vld [vmem:[#allocation5 + $0x1e4] ss:$16 sps:$4 sm:$0xff]   ;;  %v3517_v33 = vld [vmem:[#allocation5 + $0x1ec] ss:$16 sps:$4 sm:$0xff]   ;;  %v3519_v34 = vld [vmem:[#allocation5 + $0x1e0] ss:$16 sps:$4 sm:$0xff]  }
  0x57   :  { %v3520_v35 = vld [vmem:[#allocation5 + $0x1e8] ss:$16 sps:$4 sm:$0xff]   ;;  %v3521_v36 = vld [vmem:[#allocation5 + $0x1c4] ss:$16 sps:$4 sm:$0xff]   ;;  %v3523_v37 = vld [vmem:[#allocation5 + $0x1cc] ss:$16 sps:$4 sm:$0xff]  }
  0x58   :  { %v4203_v39 = vmov 1966171168   ;;  %v3525_v41 = vld [vmem:[#allocation5 + $0x1c0] ss:$16 sps:$4 sm:$0xff]   ;;  %v3526_v42 = vld [vmem:[#allocation5 + $0x1c8] ss:$16 sps:$4 sm:$0xff]  }
  0x59   :  { %547 = vmatpush1.bf16.msra.mxu0 %v3489_v14  ;;  %588 = vmatpush1.bf16.msra.mxu1 %v3490_v15  ;;  %v205_v40 = vunpack.c.l.s4 %v4203_v39  ;;  %v3527_v43 = vld [vmem:[#allocation5 + $0x1a4] ss:$16 sps:$4 sm:$0xff]   ;;  %v3529_v44 = vld [vmem:[#allocation5 + $0x1ac] ss:$16 sps:$4 sm:$0xff]   ;;  %v4267_v45 = vshrl.u32 %v175_v38, 7  ;;  %s4204_s4 = smov [#allocation13]  }
  0x5a   :  { %548 = vmatprep.subr.bf16.mxu0 %v3491_v16  ;;  %589 = vmatprep.subr.bf16.mxu1 %v3493_v17  ;;  %v3531_v47 = vld [vmem:[#allocation5 + $0x1a0] ss:$16 sps:$4 sm:$0xff]   ;;  %v3532_v48 = vld [vmem:[#allocation5 + $0x1a8] ss:$16 sps:$4 sm:$0xff]   ;;  %v3533_v49 = vld [vmem:[#allocation5 + $0x184] ss:$16 sps:$4 sm:$0xff]  }
  0x5b   :  { %v206_v46 = vunpack.c.0.s8 %v205_v40  ;;  %v3535_v50 = vld [vmem:[#allocation5 + $0x18c] ss:$16 sps:$4 sm:$0xff]   ;;  %v3537_v53 = vld [vmem:[#allocation5 + $0x180] ss:$16 sps:$4 sm:$0xff]   ;;  %v3538_v54 = vld [vmem:[#allocation5 + $0x188] ss:$16 sps:$4 sm:$0xff]  }
  0x5c   :  { %v3068_v52 = vld.sshfl [vmem:[#allocation2] sm:$0x11 pattern:$0x75316420]  ;;  %v3539_v56 = vld [vmem:[#allocation5 + $0x164] ss:$16 sps:$4 sm:$0xff]  }
  0x5d   :  { %549 = vmatpush1.bf16.msra.mxu0 %v3495_v18  ;;  %590 = vmatpush1.bf16.msra.mxu1 %v3496_v19  ;;  %v4270_v51 = vsub.s32 %v206_v46, %v4267_v45  ;;  %v203_v55 = vcombine.high %v3068_v52, %v3068_v52  ;;  %v3541_v57 = vld [vmem:[#allocation5 + $0x16c] ss:$16 sps:$4 sm:$0xff]   ;;  %v3543_v59 = vld [vmem:[#allocation5 + $0x160] ss:$16 sps:$4 sm:$0xff]   ;;  %v3544_v60 = vld [vmem:[#allocation5 + $0x168] ss:$16 sps:$4 sm:$0xff]  }
  0x5e   :  { %550 = vmatprep.subr.bf16.mxu0 %v3497_v20  ;;  %591 = vmatprep.subr.bf16.mxu1 %v3499_v21  ;;  %v3545_v61 = vld [vmem:[#allocation5 + $0x144] ss:$16 sps:$4 sm:$0xff]   ;;  %v3547_v62 = vld [vmem:[#allocation5 + $0x14c] ss:$16 sps:$4 sm:$0xff]   ;;  %v3549_v63 = vld [vmem:[#allocation5 + $0x140] ss:$16 sps:$4 sm:$0xff]  }
  0x5f   :  { %v217_v58 = vrot.slane %v203_v55, %v4270_v51  ;;  %v3550_v0 = vld [vmem:[#allocation5 + $0x148] ss:$16 sps:$4 sm:$0xff]   ;;  %v3551_v1 = vld [vmem:[#allocation5 + $0x124] ss:$16 sps:$4 sm:$0xff]   ;;  %v3553_v2 = vld [vmem:[#allocation5 + $0x12c] ss:$16 sps:$4 sm:$0xff]   ;;  %v210_v11 = vrot.slane %v3068_v52, %v4270_v51 }
  0x60   :  { %v3555_v3 = vld [vmem:[#allocation5 + $0x120] ss:$16 sps:$4 sm:$0xff]   ;;  %v3556_v4 = vld [vmem:[#allocation5 + $0x128] ss:$16 sps:$4 sm:$0xff]   ;;  %v3557_v5 = vld [vmem:[#allocation5 + $0x104] ss:$16 sps:$4 sm:$0xff]  }
  0x61   :  { %551 = vmatpush1.bf16.msra.mxu0 %v3501_v22  ;;  %592 = vmatpush1.bf16.msra.mxu1 %v3502_v23  ;;  %v3559_v6 = vld [vmem:[#allocation5 + $0x10c] ss:$16 sps:$4 sm:$0xff]   ;;  %v3561_v7 = vld [vmem:[#allocation5 + $0x100] ss:$16 sps:$4 sm:$0xff]   ;;  %v3562_v8 = vld [vmem:[#allocation5 + $0x108] ss:$16 sps:$4 sm:$0xff]  }
  0x62   :  { %552 = vmatprep.subr.bf16.mxu0 %v3503_v24  ;;  %593 = vmatprep.subr.bf16.mxu1 %v3505_v25  ;;  %v3565_v9 = vld [vmem:[#allocation8 + $0xe4] ss:$16 sps:$4 sm:$0xff]   ;;  %v3563_v12 = vld [vmem:[#allocation8 + $0xe0] ss:$16 sps:$4 sm:$0xff]   ;;  %s3056_s5 = sshll.u32 %s4204_s4, 4  ;;  %s3057_s5 = int_to_ptr.vmem [resolvable:$true] %s3056_s5 }
  0x63   :  { %572 = vmatprep.mubr.bf16.mxu0 %v217_v58  ;;  %613 = vmatprep.mubr.bf16.mxu1 %v217_v58  ;;  %v3568_v10 = vld [vmem:[#allocation8 + $0x2e4] ss:$16 sps:$4 sm:$0xff]   ;;  %v3566_v13 = vld [vmem:[#allocation8 + $0x2e0] ss:$16 sps:$4 sm:$0xff]   ;;  %s4163_s24 = scalar_lea.vmem %s3057_s5, 32  ;;  %p4168_p3 = scmp.lt.s32.totalorder %s3057_s5, %s3057_s5 }
  0x64   :  { %v3571_v14 = vld [vmem:[#allocation8 + $0xc4] ss:$16 sps:$4 sm:$0xff]   ;;  %v3569_v16 = vld [vmem:[#allocation8 + $0xc0] ss:$16 sps:$4 sm:$0xff]   ;;  %p4164_p2 = scmp.ne.s32.totalorder %s3057_s5, %s4163_s24  ;;  %p4169_p4 = scmp.lt.s32.totalorder %s4163_s24, %s4163_s24 }
  0x65   :  { %553 = vmatpush1.bf16.msra.mxu0 %v3507_v26  ;;  %594 = vmatpush1.bf16.msra.mxu1 %v3508_v27  ;;  %v3574_v15 = vld [vmem:[#allocation8 + $0x2c4] ss:$16 sps:$4 sm:$0xff]   ;;  %v3572_v17 = vld [vmem:[#allocation8 + $0x2c0] ss:$16 sps:$4 sm:$0xff]  }
  0x66   :  { %554 = vmatprep.subr.bf16.mxu0 %v3509_v28  ;;  %595 = vmatprep.subr.bf16.mxu1 %v3511_v29  ;;  %v3577_v18 = vld [vmem:[#allocation8 + $0xa4] ss:$16 sps:$4 sm:$0xff]   ;;  %v3575_v20 = vld [vmem:[#allocation8 + $0xa0] ss:$16 sps:$4 sm:$0xff]   ;;  %p4170_p5 = por %p4169_p4, %p4168_p3 }
  0x67   :  { %v3580_v19 = vld [vmem:[#allocation8 + $0x2a4] ss:$16 sps:$4 sm:$0xff]   ;;  %v3578_v21 = vld [vmem:[#allocation8 + $0x2a0] ss:$16 sps:$4 sm:$0xff]  }
  0x68   :  { %v3583_v22 = vld [vmem:[#allocation8 + $0x84] ss:$16 sps:$4 sm:$0xff]   ;;  %v3581_v24 = vld [vmem:[#allocation8 + $0x80] ss:$16 sps:$4 sm:$0xff]   ;;  %p4171_p6 = pnand %p4170_p5, %p4164_p2 }
  0x69   :  { %555 = vmatpush1.bf16.msra.mxu0 %v3513_v30  ;;  %596 = vmatpush1.bf16.msra.mxu1 %v3514_v31  ;;  %v3586_v23 = vld [vmem:[#allocation8 + $0x284] ss:$16 sps:$4 sm:$0xff]   ;;  %v3584_v25 = vld [vmem:[#allocation8 + $0x280] ss:$16 sps:$4 sm:$0xff]  }
  0x6a   :  { %556 = vmatprep.subr.bf16.mxu0 %v3515_v32  ;;  %597 = vmatprep.subr.bf16.mxu1 %v3517_v33  ;;  %v3589_v26 = vld [vmem:[#allocation8 + $0x64] ss:$16 sps:$4 sm:$0xff]   ;;  %v3587_v28 = vld [vmem:[#allocation8 + $0x60] ss:$16 sps:$4 sm:$0xff]  }
  0x6b   :  { %v3592_v27 = vld [vmem:[#allocation8 + $0x264] ss:$16 sps:$4 sm:$0xff]   ;;  %v3590_v29 = vld [vmem:[#allocation8 + $0x260] ss:$16 sps:$4 sm:$0xff]  }
  0x6c   :  { %v3595_v30 = vld [vmem:[#allocation8 + $0x44] ss:$16 sps:$4 sm:$0xff]   ;;  %v3593_v32 = vld [vmem:[#allocation8 + $0x40] ss:$16 sps:$4 sm:$0xff]  }
  0x6d   :  { %557 = vmatpush2.bf16.msra.mxu0 %v3519_v34  ;;  %598 = vmatpush2.bf16.msra.mxu1 %v3520_v35  ;;  %v3598_v31 = vld [vmem:[#allocation8 + $0x244] ss:$16 sps:$4 sm:$0xff]   ;;  %v3596_v33 = vld [vmem:[#allocation8 + $0x240] ss:$16 sps:$4 sm:$0xff]  }
  0x6e   :  { %558 = vmatprep.subr.bf16.mxu0 %v3521_v36  ;;  %599 = vmatprep.subr.bf16.mxu1 %v3523_v37  ;;  %v3601_v34 = vld [vmem:[#allocation8 + $0x24] ss:$16 sps:$4 sm:$0xff]   ;;  %v3599_v36 = vld [vmem:[#allocation8 + $0x20] ss:$16 sps:$4 sm:$0xff]  }
  0x6f   :  { %v3604_v35 = vld [vmem:[#allocation8 + $0x224] ss:$16 sps:$4 sm:$0xff]   ;;  %v3602_v37 = vld [vmem:[#allocation8 + $0x220] ss:$16 sps:$4 sm:$0xff]  }
  0x70   :  { %v3607_v38 = vld [vmem:[#allocation8 + $0x4] ss:$16 sps:$4 sm:$0xff]   ;;  %v3605_v40 = vld [vmem:[#allocation8] ss:$16 sps:$4 sm:$0xff]  }
  0x71   :  { %559 = vmatpush2.bf16.msra.mxu0 %v3525_v41  ;;  %600 = vmatpush2.bf16.msra.mxu1 %v3526_v42  ;;  %v3610_v39 = vld [vmem:[#allocation8 + $0x204] ss:$16 sps:$4 sm:$0xff]   ;;  %v3608_v41 = vld [vmem:[#allocation8 + $0x200] ss:$16 sps:$4 sm:$0xff]  }
  0x72   :  { %560 = vmatprep.subr.bf16.mxu0 %v3527_v43  ;;  %601 = vmatprep.subr.bf16.mxu1 %v3529_v44  ;;  %v3613_v42 = vld [vmem:[#allocation8 + $0x1e4] ss:$16 sps:$4 sm:$0xff]   ;;  %v3611_v44 = vld [vmem:[#allocation8 + $0x1e0] ss:$16 sps:$4 sm:$0xff]  }
  0x73   :  { %v3616_v43 = vld [vmem:[#allocation8 + $0x3e4] ss:$16 sps:$4 sm:$0xff]   ;;  %v3614_v46 = vld [vmem:[#allocation8 + $0x3e0] ss:$16 sps:$4 sm:$0xff]  }
  0x74   :  { %v3625_v52 = vld [vmem:[#allocation8 + $0x1a4] ss:$16 sps:$4 sm:$0xff]   ;;  %v3626_v55 = vld [vmem:[#allocation8 + $0x3a0] ss:$16 sps:$4 sm:$0xff]  }
  0x75   :  { %561 = vmatpush2.bf16.msra.mxu0 %v3531_v47  ;;  %602 = vmatpush2.bf16.msra.mxu1 %v3532_v48  ;;  %v3619_v47 = vld [vmem:[#allocation8 + $0x1c4] ss:$16 sps:$4 sm:$0xff]   ;;  %v3629_v58 = vld [vmem:[#allocation8 + $0x180] ss:$16 sps:$4 sm:$0xff]  }
  0x76   :  { %562 = vmatprep.subr.bf16.mxu0 %v3533_v49  ;;  %603 = vmatprep.subr.bf16.mxu1 %v3535_v50  ;;  %v3622_v48 = vld [vmem:[#allocation8 + $0x3c4] ss:$16 sps:$4 sm:$0xff]   ;;  %v3617_v49 = vld [vmem:[#allocation8 + $0x1c0] ss:$16 sps:$4 sm:$0xff]  }
  0x77   :  { %v3620_v50 = vld [vmem:[#allocation8 + $0x3c0] ss:$16 sps:$4 sm:$0xff]  }
  0x79   :  { %563 = vmatpush2.bf16.msra.mxu0 %v3537_v53  ;;  %604 = vmatpush2.bf16.msra.mxu1 %v3538_v54  ;;  %v3628_v53 = vld [vmem:[#allocation8 + $0x3a4] ss:$16 sps:$4 sm:$0xff]   ;;  %v3623_v54 = vld [vmem:[#allocation8 + $0x1a0] ss:$16 sps:$4 sm:$0xff]  }
  0x7a   :  { %564 = vmatprep.subr.bf16.mxu0 %v3539_v56  ;;  %605 = vmatprep.subr.bf16.mxu1 %v3541_v57  ;;  %v3631_v56 = vld [vmem:[#allocation8 + $0x184] ss:$16 sps:$4 sm:$0xff]  }
  0x7b   :  { %v3634_v57 = vld [vmem:[#allocation8 + $0x384] ss:$16 sps:$4 sm:$0xff]  }
  0x7d   :  { %565 = vmatpush2.bf16.msra.mxu0 %v3543_v59  ;;  %606 = vmatpush2.bf16.msra.mxu1 %v3544_v60  ;;  %v3632_v59 = vld [vmem:[#allocation8 + $0x380] ss:$16 sps:$4 sm:$0xff]   ;;  %v3637_v60 = vld [vmem:[#allocation8 + $0x164] ss:$16 sps:$4 sm:$0xff]  }
  0x7e   :  { %566 = vmatprep.subr.bf16.mxu0 %v3545_v61  ;;  %607 = vmatprep.subr.bf16.mxu1 %v3547_v62  ;;  %v3640_v61 = vld [vmem:[#allocation8 + $0x364] ss:$16 sps:$4 sm:$0xff]   ;;  %v3635_v62 = vld [vmem:[#allocation8 + $0x160] ss:$16 sps:$4 sm:$0xff]  }
  0x81   :  { %567 = vmatpush2.bf16.msra.mxu0 %v3549_v63  ;;  %608 = vmatpush2.bf16.msra.mxu1 %v3550_v0  ;;  %v3638_v63 = vld [vmem:[#allocation8 + $0x360] ss:$16 sps:$4 sm:$0xff]   ;;  %v3643_v0 = vld [vmem:[#allocation8 + $0x144] ss:$16 sps:$4 sm:$0xff]  }
  0x82   :  { %568 = vmatprep.subr.bf16.mxu0 %v3551_v1  ;;  %609 = vmatprep.subr.bf16.mxu1 %v3553_v2  ;;  %v3646_v1 = vld [vmem:[#allocation8 + $0x344] ss:$16 sps:$4 sm:$0xff]   ;;  %v3641_v2 = vld [vmem:[#allocation8 + $0x140] ss:$16 sps:$4 sm:$0xff]  }
  0x85   :  { %569 = vmatpush2.bf16.msra.mxu0 %v3555_v3  ;;  %610 = vmatpush2.bf16.msra.mxu1 %v3556_v4  ;;  %v3644_v3 = vld [vmem:[#allocation8 + $0x340] ss:$16 sps:$4 sm:$0xff]   ;;  %v3649_v4 = vld [vmem:[#allocation8 + $0x124] ss:$16 sps:$4 sm:$0xff]  }
  0x86   :  { %570 = vmatprep.subr.bf16.mxu0 %v3557_v5  ;;  %611 = vmatprep.subr.bf16.mxu1 %v3559_v6  ;;  %v3652_v5 = vld [vmem:[#allocation8 + $0x324] ss:$16 sps:$4 sm:$0xff]   ;;  %v3647_v6 = vld [vmem:[#allocation8 + $0x120] ss:$16 sps:$4 sm:$0xff]  }
  0x89   :  { %571 = vmatpush2.bf16.msra.mxu0 %v3561_v7  ;;  %612 = vmatpush2.bf16.msra.mxu1 %v3562_v8  ;;  %v3650_v7 = vld [vmem:[#allocation8 + $0x320] ss:$16 sps:$4 sm:$0xff]   ;;  %v3655_v8 = vld [vmem:[#allocation8 + $0x104] ss:$16 sps:$4 sm:$0xff]  }
  0x8a   :  { %1419 = vmatprep.subr.bf16.mxu0 %v3565_v9  ;;  %1460 = vmatprep.subr.bf16.mxu1 %v3568_v10  ;;  %v3658_v9 = vld [vmem:[#allocation8 + $0x304] ss:$16 sps:$4 sm:$0xff]   ;;  %v3653_v10 = vld [vmem:[#allocation8 + $0x100] ss:$16 sps:$4 sm:$0xff]  }
  0x8c   :  { %573 = vmatmul.mubr.bf16.vlgmr.msra.gmra.mxu0 %v210_v11  ;;  %614 = vmatmul.mubr.bf16.vlgmr.msra.gmra.mxu1 %v210_v11  ;;  %v3656_v11 = vld [vmem:[#allocation8 + $0x300] ss:$16 sps:$4 sm:$0xff]  }
  0x8d   :  { %1420 = vmatpush1.bf16.msra.mxu0 %v3563_v12  ;;  %1461 = vmatpush1.bf16.msra.mxu1 %v3566_v13  ;;  %v3661_v12 = vld [vmem:[#allocation8 + $0xec] ss:$16 sps:$4 sm:$0xff]  }
  0x8e   :  { %1421 = vmatprep.subr.bf16.mxu0 %v3571_v14  ;;  %1462 = vmatprep.subr.bf16.mxu1 %v3574_v15  ;;  %v3664_v13 = vld [vmem:[#allocation8 + $0x2ec] ss:$16 sps:$4 sm:$0xff]   ;;  %v4275_v14 = vsub.s32 0, %v4267_v45  ;;  %v4278_v15 = vsub.s32 2, %v4267_v45 }
  0x91   :  { %1422 = vmatpush1.bf16.msra.mxu0 %v3569_v16  ;;  %1463 = vmatpush1.bf16.msra.mxu1 %v3572_v17  ;;  %v102_v16 = vld [vmem:[#allocation7] ss:$4 sm:$0xf]  ;;  %v4281_v17 = vsub.s32 1, %v4267_v45 }
  0x92   :  { %1423 = vmatprep.subr.bf16.mxu0 %v3577_v18  ;;  %1464 = vmatprep.subr.bf16.mxu1 %v3580_v19  ;;  %v4284_v18 = vsub.s32 3, %v4267_v45  ;;  %v178_v19 = vrot.slane %v102_v16, %v4275_v14 }
  0x95   :  { %1424 = vmatpush1.bf16.msra.mxu0 %v3575_v20  ;;  %1465 = vmatpush1.bf16.msra.mxu1 %v3578_v21  ;;  %v186_v20 = vrot.slane %v102_v16, %v4278_v15  ;;  %v182_v21 = vrot.slane %v102_v16, %v4281_v17 }
  0x96   :  { %1425 = vmatprep.subr.bf16.mxu0 %v3583_v22  ;;  %1466 = vmatprep.subr.bf16.mxu1 %v3586_v23  ;;  %v190_v22 = vrot.slane %v102_v16, %v4284_v18  ;;  %v3715_v16 = vld [vmem:[#allocation8 + $0x1cc] ss:$16 sps:$4 sm:$0xff]  }
  0x99   :  { %1426 = vmatpush1.bf16.msra.mxu0 %v3581_v24  ;;  %1467 = vmatpush1.bf16.msra.mxu1 %v3584_v25 }
  0x9a   :  { %1427 = vmatprep.subr.bf16.mxu0 %v3589_v26  ;;  %1468 = vmatprep.subr.bf16.mxu1 %v3592_v27 }
  0x9d   :  { %1428 = vmatpush1.bf16.msra.mxu0 %v3587_v28  ;;  %1469 = vmatpush1.bf16.msra.mxu1 %v3590_v29 }
  0x9e   :  { %1429 = vmatprep.subr.bf16.mxu0 %v3595_v30  ;;  %1470 = vmatprep.subr.bf16.mxu1 %v3598_v31 }
  0xa1   :  { %1430 = vmatpush1.bf16.msra.mxu0 %v3593_v32  ;;  %1471 = vmatpush1.bf16.msra.mxu1 %v3596_v33 }
  0xa2   :  { %1431 = vmatprep.subr.bf16.mxu0 %v3601_v34  ;;  %1472 = vmatprep.subr.bf16.mxu1 %v3604_v35 }
  0xa5   :  { %1432 = vmatpush1.bf16.msra.mxu0 %v3599_v36  ;;  %1473 = vmatpush1.bf16.msra.mxu1 %v3602_v37 }
  0xa6   :  { %1433 = vmatprep.subr.bf16.mxu0 %v3607_v38  ;;  %1474 = vmatprep.subr.bf16.mxu1 %v3610_v39 }
  0xa9   :  { %1434 = vmatpush1.bf16.msra.mxu0 %v3605_v40  ;;  %1475 = vmatpush1.bf16.msra.mxu1 %v3608_v41  ;;  %v3659_v41 = vld [vmem:[#allocation8 + $0xe8] ss:$16 sps:$4 sm:$0xff]  }
  0xaa   :  { %1435 = vmatprep.subr.bf16.mxu0 %v3613_v42  ;;  %1476 = vmatprep.subr.bf16.mxu1 %v3616_v43  ;;  %v3662_v42 = vld [vmem:[#allocation8 + $0x2e8] ss:$16 sps:$4 sm:$0xff]  }
  0xad   :  { %1436 = vmatpush2.bf16.msra.mxu0 %v3611_v44  ;;  %1477 = vmatpush2.bf16.msra.mxu1 %v3614_v46  ;;  %v3667_v44 = vld [vmem:[#allocation8 + $0xcc] ss:$16 sps:$4 sm:$0xff]  }
  0xae   :  { %1437 = vmatprep.subr.bf16.mxu0 %v3619_v47  ;;  %1478 = vmatprep.subr.bf16.mxu1 %v3622_v48  ;;  %v3670_v46 = vld [vmem:[#allocation8 + $0x2cc] ss:$16 sps:$4 sm:$0xff]   ;;  %v3665_v47 = vld [vmem:[#allocation8 + $0xc8] ss:$16 sps:$4 sm:$0xff]  }
  0xaf   :  { %v3668_v48 = vld [vmem:[#allocation8 + $0x2c8] ss:$16 sps:$4 sm:$0xff]  }
  0xb1   :  { %1438 = vmatpush2.bf16.msra.mxu0 %v3617_v49  ;;  %1479 = vmatpush2.bf16.msra.mxu1 %v3620_v50  ;;  %v3673_v49 = vld [vmem:[#allocation8 + $0xac] ss:$16 sps:$4 sm:$0xff]  }
  0xb2   :  { %1439 = vmatprep.subr.bf16.mxu0 %v3625_v52  ;;  %1480 = vmatprep.subr.bf16.mxu1 %v3628_v53  ;;  %v3676_v50 = vld [vmem:[#allocation8 + $0x2ac] ss:$16 sps:$4 sm:$0xff]   ;;  %v3671_v52 = vld [vmem:[#allocation8 + $0xa8] ss:$16 sps:$4 sm:$0xff]  }
  0xb3   :  { %v3674_v53 = vld [vmem:[#allocation8 + $0x2a8] ss:$16 sps:$4 sm:$0xff]  }
  0xb5   :  { %1440 = vmatpush2.bf16.msra.mxu0 %v3623_v54  ;;  %1481 = vmatpush2.bf16.msra.mxu1 %v3626_v55  ;;  %v3679_v54 = vld [vmem:[#allocation8 + $0x8c] ss:$16 sps:$4 sm:$0xff]  }
  0xb6   :  { %1441 = vmatprep.subr.bf16.mxu0 %v3631_v56  ;;  %1482 = vmatprep.subr.bf16.mxu1 %v3634_v57  ;;  %v3682_v55 = vld [vmem:[#allocation8 + $0x28c] ss:$16 sps:$4 sm:$0xff]   ;;  %v3677_v56 = vld [vmem:[#allocation8 + $0x88] ss:$16 sps:$4 sm:$0xff]  }
  0xb7   :  { %v3680_v57 = vld [vmem:[#allocation8 + $0x288] ss:$16 sps:$4 sm:$0xff]  }
  0xb9   :  { %1442 = vmatpush2.bf16.msra.mxu0 %v3629_v58  ;;  %1483 = vmatpush2.bf16.msra.mxu1 %v3632_v59  ;;  %v3685_v58 = vld [vmem:[#allocation8 + $0x6c] ss:$16 sps:$4 sm:$0xff]  }
  0xba   :  { %1443 = vmatprep.subr.bf16.mxu0 %v3637_v60  ;;  %1484 = vmatprep.subr.bf16.mxu1 %v3640_v61  ;;  %v3688_v59 = vld [vmem:[#allocation8 + $0x26c] ss:$16 sps:$4 sm:$0xff]   ;;  %v3683_v60 = vld [vmem:[#allocation8 + $0x68] ss:$16 sps:$4 sm:$0xff]  }
  0xbb   :  { %v3686_v61 = vld [vmem:[#allocation8 + $0x268] ss:$16 sps:$4 sm:$0xff]  }
  0xbd   :  { %1444 = vmatpush2.bf16.msra.mxu0 %v3635_v62  ;;  %1485 = vmatpush2.bf16.msra.mxu1 %v3638_v63  ;;  %v3691_v62 = vld [vmem:[#allocation8 + $0x4c] ss:$16 sps:$4 sm:$0xff]  }
  0xbe   :  { %1445 = vmatprep.subr.bf16.mxu0 %v3643_v0  ;;  %1486 = vmatprep.subr.bf16.mxu1 %v3646_v1  ;;  %v3694_v63 = vld [vmem:[#allocation8 + $0x24c] ss:$16 sps:$4 sm:$0xff]   ;;  %v3689_v0 = vld [vmem:[#allocation8 + $0x48] ss:$16 sps:$4 sm:$0xff]  }
  0xbf   :  { %v3692_v1 = vld [vmem:[#allocation8 + $0x248] ss:$16 sps:$4 sm:$0xff]  }
  0xc1   :  { %1446 = vmatpush2.bf16.msra.mxu0 %v3641_v2  ;;  %1487 = vmatpush2.bf16.msra.mxu1 %v3644_v3  ;;  %v3697_v2 = vld [vmem:[#allocation8 + $0x2c] ss:$16 sps:$4 sm:$0xff]  }
  0xc2   :  { %1447 = vmatprep.subr.bf16.mxu0 %v3649_v4  ;;  %1488 = vmatprep.subr.bf16.mxu1 %v3652_v5  ;;  %v3700_v3 = vld [vmem:[#allocation8 + $0x22c] ss:$16 sps:$4 sm:$0xff]   ;;  %v3695_v4 = vld [vmem:[#allocation8 + $0x28] ss:$16 sps:$4 sm:$0xff]  }
  0xc3   :  { %v3698_v5 = vld [vmem:[#allocation8 + $0x228] ss:$16 sps:$4 sm:$0xff]  }
  0xc5   :  { %1448 = vmatpush2.bf16.msra.mxu0 %v3647_v6  ;;  %1489 = vmatpush2.bf16.msra.mxu1 %v3650_v7  ;;  %v3703_v6 = vld [vmem:[#allocation8 + $0xc] ss:$16 sps:$4 sm:$0xff]  }
  0xc6   :  { %1449 = vmatprep.subr.bf16.mxu0 %v3655_v8  ;;  %1490 = vmatprep.subr.bf16.mxu1 %v3658_v9  ;;  %v3706_v7 = vld [vmem:[#allocation8 + $0x20c] ss:$16 sps:$4 sm:$0xff]   ;;  %v3701_v8 = vld [vmem:[#allocation8 + $0x8] ss:$16 sps:$4 sm:$0xff]  }
  0xc7   :  { %v3704_v9 = vld [vmem:[#allocation8 + $0x208] ss:$16 sps:$4 sm:$0xff]  }
  0xc9   :  { %1450 = vmatpush2.bf16.msra.mxu0 %v3653_v10  ;;  %1491 = vmatpush2.bf16.msra.mxu1 %v3656_v11  ;;  %v3709_v10 = vld [vmem:[#allocation8 + $0x1ec] ss:$16 sps:$4 sm:$0xff]  }
  0xca   :  { %1501 = vmatprep.subr.bf16.mxu0 %v3661_v12  ;;  %1542 = vmatprep.subr.bf16.mxu1 %v3664_v13  ;;  %v3712_v11 = vld [vmem:[#allocation8 + $0x3ec] ss:$16 sps:$4 sm:$0xff]   ;;  %v3707_v12 = vld [vmem:[#allocation8 + $0x1e8] ss:$16 sps:$4 sm:$0xff]  }
  0xcb   :  { %v3710_v13 = vld [vmem:[#allocation8 + $0x3e8] ss:$16 sps:$4 sm:$0xff]  }
 0x14c   :  { %v574_v23 = vpop.f32.mrf.mxu0  ;;  %v615_v24 = vpop.f32.mrf.mxu1 }
 0x14d   :  { %v575_v25 = vadd.f32 %v574_v23, %v178_v19  ;;  %v616_v26 = vadd.f32 %v615_v24, %v186_v20  ;;  %v3718_v19 = vld [vmem:[#allocation8 + $0x3cc] ss:$16 sps:$4 sm:$0xff]   ;;  %v3713_v20 = vld [vmem:[#allocation8 + $0x1c8] ss:$16 sps:$4 sm:$0xff]  }
 0x14e   :  { %v576_v27 = vpop.f32.mrf.mxu0  ;;  %v617_v28 = vpop.f32.mrf.mxu1  ;;  %v3724_v23 = vld [vmem:[#allocation8 + $0x3ac] ss:$16 sps:$4 sm:$0xff]   ;;  %v3719_v24 = vld [vmem:[#allocation8 + $0x1a8] ss:$16 sps:$4 sm:$0xff]  }
 0x14f   :  { %v624_v29 = vmax.f32 %v616_v26, 0.0  ;;  %v577_v30 = vadd.f32 %v576_v27, %v182_v21  ;;  %v618_v31 = vadd.f32 %v617_v28, %v190_v22  ;;  %v622_v32 = vmax.f32 %v575_v25, 0.0  ;;  %v3716_v21 = vld [vmem:[#allocation8 + $0x3c8] ss:$16 sps:$4 sm:$0xff]   ;;  %v3721_v22 = vld [vmem:[#allocation8 + $0x1ac] ss:$16 sps:$4 sm:$0xff]  }
 0x150   :  { %v578_v45 = vpop.f32.mrf.mxu0  ;;  %v619_v33 = vpop.f32.mrf.mxu1  ;;  %v3722_v25 = vld [vmem:[#allocation8 + $0x3a8] ss:$16 sps:$4 sm:$0xff]   ;;  %v3727_v26 = vld [vmem:[#allocation8 + $0x18c] ss:$16 sps:$4 sm:$0xff]  }
 0x151   :  { %v623_v34 = vmax.f32 %v577_v30, 0.0  ;;  %v625_v35 = vmax.f32 %v618_v31, 0.0  ;;  %v4290_v36 = vpack.c.bf16 %v624_v29, %v624_v29  ;;  %v4292_v43 = vpack.c.bf16 %v622_v32, %v622_v32  ;;  %v3730_v27 = vld [vmem:[#allocation8 + $0x38c] ss:$16 sps:$4 sm:$0xff]   ;;  %v3725_v28 = vld [vmem:[#allocation8 + $0x188] ss:$16 sps:$4 sm:$0xff]  }
 0x152   :  { %v579_v37 = vpop.f32.mrf.mxu0  ;;  %v620_v38 = vpop.f32.mrf.mxu1  ;;  %v3728_v29 = vld [vmem:[#allocation8 + $0x388] ss:$16 sps:$4 sm:$0xff]   ;;  %v3733_v30 = vld [vmem:[#allocation8 + $0x16c] ss:$16 sps:$4 sm:$0xff]  }
 0x153   :  { %v627_v39 = vpack.c.bf16 %v623_v34, %v623_v34  ;;  %v629_v40 = vpack.c.bf16 %v625_v35, %v625_v35  ;;  %v3736_v31 = vld [vmem:[#allocation8 + $0x36c] ss:$16 sps:$4 sm:$0xff]   ;;  %v3731_v32 = vld [vmem:[#allocation8 + $0x168] ss:$16 sps:$4 sm:$0xff]  }
 0x154   :  { %v3734_v45 = vld [vmem:[#allocation8 + $0x368] ss:$16 sps:$4 sm:$0xff]   ;;  %v3739_v33 = vld [vmem:[#allocation8 + $0x14c] ss:$16 sps:$4 sm:$0xff]  }
 0x155   :  { %1451 = vmatprep.mubr.bf16.mxu0 %v627_v39  ;;  %1492 = vmatprep.mubr.bf16.mxu1 %v629_v40  ;;  %v3742_v34 = vld [vmem:[#allocation8 + $0x34c] ss:$16 sps:$4 sm:$0xff]   ;;  %v3737_v35 = vld [vmem:[#allocation8 + $0x148] ss:$16 sps:$4 sm:$0xff]  }
 0x156   :  { %1452 = vmatmul.mubr.bf16.vlgmr.msra.gmra.mxu0 %v4292_v43  ;;  %1493 = vmatmul.mubr.bf16.vlgmr.msra.gmra.mxu1 %v4290_v36  ;;  %v3740_v37 = vld [vmem:[#allocation8 + $0x348] ss:$16 sps:$4 sm:$0xff]   ;;  %v3745_v38 = vld [vmem:[#allocation8 + $0x12c] ss:$16 sps:$4 sm:$0xff]  }
 0x157   :  { %1502 = vmatpush1.bf16.msra.mxu0 %v3659_v41  ;;  %1543 = vmatpush1.bf16.msra.mxu1 %v3662_v42  ;;  %v3746_v41 = vld [vmem:[#allocation8 + $0x328] ss:$16 sps:$4 sm:$0xff]   ;;  %v3751_v42 = vld [vmem:[#allocation8 + $0x10c] ss:$16 sps:$4 sm:$0xff]  }
 0x158   :  { %1533 = vmatprep.mubr.bf16.mxu0 %v627_v39  ;;  %1574 = vmatprep.mubr.bf16.mxu1 %v629_v40  ;;  %v3748_v39 = vld [vmem:[#allocation8 + $0x32c] ss:$16 sps:$4 sm:$0xff]   ;;  %v3743_v40 = vld [vmem:[#allocation8 + $0x128] ss:$16 sps:$4 sm:$0xff]  }
 0x159   :  { %1503 = vmatprep.subr.bf16.mxu0 %v3667_v44  ;;  %1544 = vmatprep.subr.bf16.mxu1 %v3670_v46  ;;  %v3754_v44 = vld [vmem:[#allocation8 + $0x30c] ss:$16 sps:$4 sm:$0xff]   ;;  %v3749_v46 = vld [vmem:[#allocation8 + $0x108] ss:$16 sps:$4 sm:$0xff]  }
 0x15b   :  { %1504 = vmatpush1.bf16.msra.mxu0 %v3665_v47  ;;  %1545 = vmatpush1.bf16.msra.mxu1 %v3668_v48  ;;  %v3752_v47 = vld [vmem:[#allocation8 + $0x308] ss:$16 sps:$4 sm:$0xff]   ;;  %v3757_v48 = vld [vmem:[#allocation10 + $0xe4] ss:$16 sps:$4 sm:$0xff]  }
 0x15c   :  { %1505 = vmatprep.subr.bf16.mxu0 %v3673_v49  ;;  %1546 = vmatprep.subr.bf16.mxu1 %v3676_v50  ;;  %v3755_v49 = vld [vmem:[#allocation10 + $0xe0] ss:$16 sps:$4 sm:$0xff]   ;;  %v3760_v50 = vld [vmem:[#allocation10 + $0xc4] ss:$16 sps:$4 sm:$0xff]  }
 0x15f   :  { %1506 = vmatpush1.bf16.msra.mxu0 %v3671_v52  ;;  %1547 = vmatpush1.bf16.msra.mxu1 %v3674_v53  ;;  %v3758_v52 = vld [vmem:[#allocation10 + $0xc0] ss:$16 sps:$4 sm:$0xff]   ;;  %v3763_v53 = vld [vmem:[#allocation10 + $0xa4] ss:$16 sps:$4 sm:$0xff]  }
 0x160   :  { %1507 = vmatprep.subr.bf16.mxu0 %v3679_v54  ;;  %1548 = vmatprep.subr.bf16.mxu1 %v3682_v55  ;;  %v3761_v54 = vld [vmem:[#allocation10 + $0xa0] ss:$16 sps:$4 sm:$0xff]   ;;  %v3766_v55 = vld [vmem:[#allocation10 + $0x84] ss:$16 sps:$4 sm:$0xff]  }
 0x163   :  { %1508 = vmatpush1.bf16.msra.mxu0 %v3677_v56  ;;  %1549 = vmatpush1.bf16.msra.mxu1 %v3680_v57  ;;  %v3764_v56 = vld [vmem:[#allocation10 + $0x80] ss:$16 sps:$4 sm:$0xff]  }
 0x164   :  { %1509 = vmatprep.subr.bf16.mxu0 %v3685_v58  ;;  %1550 = vmatprep.subr.bf16.mxu1 %v3688_v59  ;;  %v3803_v57 = vld [vmem:[#allocation10 + $0x2e0] ss:$16 sps:$4 sm:$0xff]   ;;  %v3805_v58 = vld [vmem:[#allocation10 + $0x2e4] ss:$16 sps:$4 sm:$0xff]  }
 0x165   :  { %v3769_v59 = vld [vmem:[#allocation10 + $0x64] ss:$16 sps:$4 sm:$0xff]  }
 0x167   :  { %1510 = vmatpush1.bf16.msra.mxu0 %v3683_v60  ;;  %1551 = vmatpush1.bf16.msra.mxu1 %v3686_v61  ;;  %v3809_v60 = vld [vmem:[#allocation10 + $0x2c0] ss:$16 sps:$4 sm:$0xff]   ;;  %v3772_v61 = vld [vmem:[#allocation10 + $0x44] ss:$16 sps:$4 sm:$0xff]  }
 0x168   :  { %1511 = vmatprep.subr.bf16.mxu0 %v3691_v62  ;;  %1552 = vmatprep.subr.bf16.mxu1 %v3694_v63  ;;  %v3770_v62 = vld [vmem:[#allocation10 + $0x40] ss:$16 sps:$4 sm:$0xff]  }
 0x169   :  { %v3815_v63 = vld [vmem:[#allocation10 + $0x2a0] ss:$16 sps:$4 sm:$0xff]  }
 0x16b   :  { %1512 = vmatpush1.bf16.msra.mxu0 %v3689_v0  ;;  %1553 = vmatpush1.bf16.msra.mxu1 %v3692_v1  ;;  %v3817_v0 = vld [vmem:[#allocation10 + $0x2a4] ss:$16 sps:$4 sm:$0xff]  }
 0x16c   :  { %1513 = vmatprep.subr.bf16.mxu0 %v3697_v2  ;;  %1554 = vmatprep.subr.bf16.mxu1 %v3700_v3  ;;  %v3775_v1 = vld [vmem:[#allocation10 + $0x24] ss:$16 sps:$4 sm:$0xff]   ;;  %v3773_v2 = vld [vmem:[#allocation10 + $0x20] ss:$16 sps:$4 sm:$0xff]  }
 0x16d   :  { %v3821_v3 = vld [vmem:[#allocation10 + $0x280] ss:$16 sps:$4 sm:$0xff]  }
 0x16f   :  { %1514 = vmatpush1.bf16.msra.mxu0 %v3695_v4  ;;  %1555 = vmatpush1.bf16.msra.mxu1 %v3698_v5  ;;  %v3823_v4 = vld [vmem:[#allocation10 + $0x284] ss:$16 sps:$4 sm:$0xff]  }
 0x170   :  { %1515 = vmatprep.subr.bf16.mxu0 %v3703_v6  ;;  %1556 = vmatprep.subr.bf16.mxu1 %v3706_v7  ;;  %v3778_v5 = vld [vmem:[#allocation10 + $0x4] ss:$16 sps:$4 sm:$0xff]   ;;  %v3776_v6 = vld [vmem:[#allocation10] ss:$16 sps:$4 sm:$0xff]  }
 0x171   :  { %v3827_v7 = vld [vmem:[#allocation10 + $0x260] ss:$16 sps:$4 sm:$0xff]  }
 0x173   :  { %1516 = vmatpush1.bf16.msra.mxu0 %v3701_v8  ;;  %1557 = vmatpush1.bf16.msra.mxu1 %v3704_v9  ;;  %v3829_v8 = vld [vmem:[#allocation10 + $0x264] ss:$16 sps:$4 sm:$0xff]  }
 0x174   :  { %1517 = vmatprep.subr.bf16.mxu0 %v3709_v10  ;;  %1558 = vmatprep.subr.bf16.mxu1 %v3712_v11  ;;  %v3781_v9 = vld [vmem:[#allocation10 + $0x1e4] ss:$16 sps:$4 sm:$0xff]   ;;  %v3779_v10 = vld [vmem:[#allocation10 + $0x1e0] ss:$16 sps:$4 sm:$0xff]  }
 0x175   :  { %v3833_v11 = vld [vmem:[#allocation10 + $0x240] ss:$16 sps:$4 sm:$0xff]  }
 0x177   :  { %1518 = vmatpush2.bf16.msra.mxu0 %v3707_v12  ;;  %1559 = vmatpush2.bf16.msra.mxu1 %v3710_v13  ;;  %v3835_v12 = vld [vmem:[#allocation10 + $0x244] ss:$16 sps:$4 sm:$0xff]  }
 0x178   :  { %1519 = vmatprep.subr.bf16.mxu0 %v3715_v16  ;;  %1560 = vmatprep.subr.bf16.mxu1 %v3718_v19  ;;  %v3784_v13 = vld [vmem:[#allocation10 + $0x1c4] ss:$16 sps:$4 sm:$0xff]   ;;  %v3782_v16 = vld [vmem:[#allocation10 + $0x1c0] ss:$16 sps:$4 sm:$0xff]  }
 0x179   :  { %v3839_v19 = vld [vmem:[#allocation10 + $0x220] ss:$16 sps:$4 sm:$0xff]  }
 0x17b   :  { %1520 = vmatpush2.bf16.msra.mxu0 %v3713_v20  ;;  %1561 = vmatpush2.bf16.msra.mxu1 %v3716_v21  ;;  %v3841_v20 = vld [vmem:[#allocation10 + $0x224] ss:$16 sps:$4 sm:$0xff]  }
 0x17c   :  { %1521 = vmatprep.subr.bf16.mxu0 %v3721_v22  ;;  %1562 = vmatprep.subr.bf16.mxu1 %v3724_v23  ;;  %v3787_v21 = vld [vmem:[#allocation10 + $0x1a4] ss:$16 sps:$4 sm:$0xff]   ;;  %v3785_v22 = vld [vmem:[#allocation10 + $0x1a0] ss:$16 sps:$4 sm:$0xff]  }
 0x17d   :  { %v3845_v23 = vld [vmem:[#allocation10 + $0x200] ss:$16 sps:$4 sm:$0xff]  }
 0x17f   :  { %1522 = vmatpush2.bf16.msra.mxu0 %v3719_v24  ;;  %1563 = vmatpush2.bf16.msra.mxu1 %v3722_v25  ;;  %v3847_v24 = vld [vmem:[#allocation10 + $0x204] ss:$16 sps:$4 sm:$0xff]  }
 0x180   :  { %1523 = vmatprep.subr.bf16.mxu0 %v3727_v26  ;;  %1564 = vmatprep.subr.bf16.mxu1 %v3730_v27  ;;  %v3790_v25 = vld [vmem:[#allocation10 + $0x184] ss:$16 sps:$4 sm:$0xff]   ;;  %v3788_v26 = vld [vmem:[#allocation10 + $0x180] ss:$16 sps:$4 sm:$0xff]  }
 0x181   :  { %v3851_v27 = vld [vmem:[#allocation10 + $0x3e0] ss:$16 sps:$4 sm:$0xff]  }
 0x183   :  { %1524 = vmatpush2.bf16.msra.mxu0 %v3725_v28  ;;  %1565 = vmatpush2.bf16.msra.mxu1 %v3728_v29  ;;  %v3853_v28 = vld [vmem:[#allocation10 + $0x3e4] ss:$16 sps:$4 sm:$0xff]  }
 0x184   :  { %1525 = vmatprep.subr.bf16.mxu0 %v3733_v30  ;;  %1566 = vmatprep.subr.bf16.mxu1 %v3736_v31  ;;  %v3793_v29 = vld [vmem:[#allocation10 + $0x164] ss:$16 sps:$4 sm:$0xff]   ;;  %v3791_v30 = vld [vmem:[#allocation10 + $0x160] ss:$16 sps:$4 sm:$0xff]  }
 0x185   :  { %v3857_v31 = vld [vmem:[#allocation10 + $0x3c0] ss:$16 sps:$4 sm:$0xff]  }
 0x187   :  { %1526 = vmatpush2.bf16.msra.mxu0 %v3731_v32  ;;  %1567 = vmatpush2.bf16.msra.mxu1 %v3734_v45  ;;  %v3859_v32 = vld [vmem:[#allocation10 + $0x3c4] ss:$16 sps:$4 sm:$0xff]  }
 0x188   :  { %1527 = vmatprep.subr.bf16.mxu0 %v3739_v33  ;;  %1568 = vmatprep.subr.bf16.mxu1 %v3742_v34  ;;  %v3796_v45 = vld [vmem:[#allocation10 + $0x144] ss:$16 sps:$4 sm:$0xff]   ;;  %v3794_v33 = vld [vmem:[#allocation10 + $0x140] ss:$16 sps:$4 sm:$0xff]  }
 0x189   :  { %v3863_v34 = vld [vmem:[#allocation10 + $0x3a0] ss:$16 sps:$4 sm:$0xff]  }
 0x18b   :  { %1528 = vmatpush2.bf16.msra.mxu0 %v3737_v35  ;;  %1569 = vmatpush2.bf16.msra.mxu1 %v3740_v37  ;;  %v3865_v35 = vld [vmem:[#allocation10 + $0x3a4] ss:$16 sps:$4 sm:$0xff]  }
 0x18c   :  { %1529 = vmatprep.subr.bf16.mxu0 %v3745_v38  ;;  %1570 = vmatprep.subr.bf16.mxu1 %v3748_v39  ;;  %v3799_v37 = vld [vmem:[#allocation10 + $0x124] ss:$16 sps:$4 sm:$0xff]   ;;  %v3797_v38 = vld [vmem:[#allocation10 + $0x120] ss:$16 sps:$4 sm:$0xff]  }
 0x18d   :  { %v3869_v39 = vld [vmem:[#allocation10 + $0x380] ss:$16 sps:$4 sm:$0xff]  }
 0x18f   :  { %1530 = vmatpush2.bf16.msra.mxu0 %v3743_v40  ;;  %1571 = vmatpush2.bf16.msra.mxu1 %v3746_v41  ;;  %v3871_v40 = vld [vmem:[#allocation10 + $0x384] ss:$16 sps:$4 sm:$0xff]  }
 0x190   :  { %1531 = vmatprep.subr.bf16.mxu0 %v3751_v42  ;;  %1572 = vmatprep.subr.bf16.mxu1 %v3754_v44  ;;  %v3802_v41 = vld [vmem:[#allocation10 + $0x104] ss:$16 sps:$4 sm:$0xff]   ;;  %v3800_v42 = vld [vmem:[#allocation10 + $0x100] ss:$16 sps:$4 sm:$0xff]  }
 0x191   :  { %v3875_v44 = vld [vmem:[#allocation10 + $0x360] ss:$16 sps:$4 sm:$0xff]  }
 0x193   :  { %1532 = vmatpush2.bf16.msra.mxu0 %v3749_v46  ;;  %1573 = vmatpush2.bf16.msra.mxu1 %v3752_v47  ;;  %v3877_v46 = vld [vmem:[#allocation10 + $0x364] ss:$16 sps:$4 sm:$0xff]   ;;  %v3808_v47 = vld [vmem:[#allocation10 + $0xec] ss:$16 sps:$4 sm:$0xff]  }
 0x194   :  { %2380 = vmatprep.subr.bf16.mxu0 %v3757_v48  ;;  %2421 = vmatprep.subr.bf16.mxu1 %v3805_v58  ;;  %v3881_v48 = vld [vmem:[#allocation10 + $0x340] ss:$16 sps:$4 sm:$0xff]  }
 0x196   :  { %1534 = vmatmul.mubr.bf16.vlgmr.msra.gmra.mxu0 %v4292_v43  ;;  %1575 = vmatmul.mubr.bf16.vlgmr.msra.gmra.mxu1 %v4290_v36  ;;  %v3767_v43 = vld [vmem:[#allocation10 + $0x60] ss:$16 sps:$4 sm:$0xff]   ;;  %v3811_v36 = vld [vmem:[#allocation10 + $0x2c4] ss:$16 sps:$4 sm:$0xff]  }
 0x197   :  { %2381 = vmatpush1.bf16.msra.mxu0 %v3755_v49  ;;  %2422 = vmatpush1.bf16.msra.mxu1 %v3803_v57  ;;  %v3883_v49 = vld [vmem:[#allocation10 + $0x344] ss:$16 sps:$4 sm:$0xff]  }
 0x198   :  { %2382 = vmatprep.subr.bf16.mxu0 %v3760_v50  ;;  %2423 = vmatprep.subr.bf16.mxu1 %v3811_v36  ;;  %v3889_v50 = vld [vmem:[#allocation10 + $0x324] ss:$16 sps:$4 sm:$0xff]  }
 0x19b   :  { %2383 = vmatpush1.bf16.msra.mxu0 %v3758_v52  ;;  %2424 = vmatpush1.bf16.msra.mxu1 %v3809_v60  ;;  %v3887_v52 = vld [vmem:[#allocation10 + $0x320] ss:$16 sps:$4 sm:$0xff]  }
 0x19c   :  { %2384 = vmatprep.subr.bf16.mxu0 %v3763_v53  ;;  %2425 = vmatprep.subr.bf16.mxu1 %v3817_v0  ;;  %v3895_v53 = vld [vmem:[#allocation10 + $0x304] ss:$16 sps:$4 sm:$0xff]  }
 0x19f   :  { %2385 = vmatpush1.bf16.msra.mxu0 %v3761_v54  ;;  %2426 = vmatpush1.bf16.msra.mxu1 %v3815_v63  ;;  %v3893_v54 = vld [vmem:[#allocation10 + $0x300] ss:$16 sps:$4 sm:$0xff]  }
 0x1a0   :  { %2386 = vmatprep.subr.bf16.mxu0 %v3766_v55  ;;  %2427 = vmatprep.subr.bf16.mxu1 %v3823_v4  ;;  %v3901_v55 = vld [vmem:[#allocation10 + $0x2ec] ss:$16 sps:$4 sm:$0xff]  }
 0x1a3   :  { %2387 = vmatpush1.bf16.msra.mxu0 %v3764_v56  ;;  %2428 = vmatpush1.bf16.msra.mxu1 %v3821_v3  ;;  %v4298_v56 = vld [vmem:[#allocation7 + $0x1] ss:$4 sm:$0xf] }
 0x1a4   :  { %2388 = vmatprep.subr.bf16.mxu0 %v3769_v59  ;;  %2429 = vmatprep.subr.bf16.mxu1 %v3829_v8  ;;  %v762_v57 = vrot.slane %v4298_v56, %v4275_v14  ;;  %v766_v58 = vrot.slane %v4298_v56, %v4281_v17  ;;  %v3806_v8 = vld [vmem:[#allocation10 + $0xe8] ss:$16 sps:$4 sm:$0xff]  }
 0x1a7   :  { %2389 = vmatpush1.bf16.msra.mxu0 %v3767_v43  ;;  %2430 = vmatpush1.bf16.msra.mxu1 %v3827_v7 }
 0x1a8   :  { %2390 = vmatprep.subr.bf16.mxu0 %v3772_v61  ;;  %2431 = vmatprep.subr.bf16.mxu1 %v3835_v12  ;;  %v3820_v12 = vld [vmem:[#allocation10 + $0xac] ss:$16 sps:$4 sm:$0xff]  }
 0x1ab   :  { %2391 = vmatpush1.bf16.msra.mxu0 %v3770_v62  ;;  %2432 = vmatpush1.bf16.msra.mxu1 %v3833_v11  ;;  %v3812_v11 = vld [vmem:[#allocation10 + $0xc8] ss:$16 sps:$4 sm:$0xff]  }
 0x1ac   :  { %2392 = vmatprep.subr.bf16.mxu0 %v3775_v1  ;;  %2433 = vmatprep.subr.bf16.mxu1 %v3841_v20  ;;  %v3832_v20 = vld [vmem:[#allocation10 + $0x6c] ss:$16 sps:$4 sm:$0xff]  }
 0x1af   :  { %2393 = vmatpush1.bf16.msra.mxu0 %v3773_v2  ;;  %2434 = vmatpush1.bf16.msra.mxu1 %v3839_v19  ;;  %v3824_v19 = vld [vmem:[#allocation10 + $0x88] ss:$16 sps:$4 sm:$0xff]  }
 0x1b0   :  { %2394 = vmatprep.subr.bf16.mxu0 %v3778_v5  ;;  %2435 = vmatprep.subr.bf16.mxu1 %v3847_v24  ;;  %v3844_v24 = vld [vmem:[#allocation10 + $0x2c] ss:$16 sps:$4 sm:$0xff]  }
 0x1b3   :  { %2395 = vmatpush1.bf16.msra.mxu0 %v3776_v6  ;;  %2436 = vmatpush1.bf16.msra.mxu1 %v3845_v23  ;;  %v3836_v23 = vld [vmem:[#allocation10 + $0x48] ss:$16 sps:$4 sm:$0xff]  }
 0x1b4   :  { %2396 = vmatprep.subr.bf16.mxu0 %v3781_v9  ;;  %2437 = vmatprep.subr.bf16.mxu1 %v3853_v28  ;;  %v3856_v28 = vld [vmem:[#allocation10 + $0x1ec] ss:$16 sps:$4 sm:$0xff]  }
 0x1b7   :  { %2397 = vmatpush2.bf16.msra.mxu0 %v3779_v10  ;;  %2438 = vmatpush2.bf16.msra.mxu1 %v3851_v27  ;;  %v3814_v10 = vld [vmem:[#allocation10 + $0xcc] ss:$16 sps:$4 sm:$0xff]   ;;  %v3848_v27 = vld [vmem:[#allocation10 + $0x8] ss:$16 sps:$4 sm:$0xff]  }
 0x1b8   :  { %2398 = vmatprep.subr.bf16.mxu0 %v3784_v13  ;;  %2439 = vmatprep.subr.bf16.mxu1 %v3859_v32  ;;  %v3818_v13 = vld [vmem:[#allocation10 + $0xa8] ss:$16 sps:$4 sm:$0xff]   ;;  %v3868_v32 = vld [vmem:[#allocation10 + $0x1ac] ss:$16 sps:$4 sm:$0xff]  }
 0x1bb   :  { %2399 = vmatpush2.bf16.msra.mxu0 %v3782_v16  ;;  %2440 = vmatpush2.bf16.msra.mxu1 %v3857_v31  ;;  %v3826_v16 = vld [vmem:[#allocation10 + $0x8c] ss:$16 sps:$4 sm:$0xff]   ;;  %v3860_v31 = vld [vmem:[#allocation10 + $0x1c8] ss:$16 sps:$4 sm:$0xff]  }
 0x1bc   :  { %2400 = vmatprep.subr.bf16.mxu0 %v3787_v21  ;;  %2441 = vmatprep.subr.bf16.mxu1 %v3865_v35  ;;  %v3830_v21 = vld [vmem:[#allocation10 + $0x68] ss:$16 sps:$4 sm:$0xff]   ;;  %v3880_v35 = vld [vmem:[#allocation10 + $0x16c] ss:$16 sps:$4 sm:$0xff]  }
 0x1bf   :  { %2401 = vmatpush2.bf16.msra.mxu0 %v3785_v22  ;;  %2442 = vmatpush2.bf16.msra.mxu1 %v3863_v34  ;;  %v3838_v22 = vld [vmem:[#allocation10 + $0x4c] ss:$16 sps:$4 sm:$0xff]   ;;  %v3872_v34 = vld [vmem:[#allocation10 + $0x188] ss:$16 sps:$4 sm:$0xff]  }
 0x1c0   :  { %2402 = vmatprep.subr.bf16.mxu0 %v3790_v25  ;;  %2443 = vmatprep.subr.bf16.mxu1 %v3871_v40  ;;  %v3842_v25 = vld [vmem:[#allocation10 + $0x28] ss:$16 sps:$4 sm:$0xff]  }
 0x1c1   :  { %v3884_v40 = vld [vmem:[#allocation10 + $0x148] ss:$16 sps:$4 sm:$0xff]  }
 0x1c3   :  { %2403 = vmatpush2.bf16.msra.mxu0 %v3788_v26  ;;  %2444 = vmatpush2.bf16.msra.mxu1 %v3869_v39  ;;  %v3850_v26 = vld [vmem:[#allocation10 + $0xc] ss:$16 sps:$4 sm:$0xff]   ;;  %v770_v39 = vrot.slane %v4298_v56, %v4278_v15 }
 0x1c4   :  { %2404 = vmatprep.subr.bf16.mxu0 %v3793_v29  ;;  %2445 = vmatprep.subr.bf16.mxu1 %v3877_v46  ;;  %v3854_v29 = vld [vmem:[#allocation10 + $0x1e8] ss:$16 sps:$4 sm:$0xff]  }
 0x1c7   :  { %2405 = vmatpush2.bf16.msra.mxu0 %v3791_v30  ;;  %2446 = vmatpush2.bf16.msra.mxu1 %v3875_v44  ;;  %v3862_v30 = vld [vmem:[#allocation10 + $0x1cc] ss:$16 sps:$4 sm:$0xff]  }
 0x1c8   :  { %2406 = vmatprep.subr.bf16.mxu0 %v3796_v45  ;;  %2447 = vmatprep.subr.bf16.mxu1 %v3883_v49  ;;  %v3866_v45 = vld [vmem:[#allocation10 + $0x1a8] ss:$16 sps:$4 sm:$0xff]  }
 0x1cb   :  { %2407 = vmatpush2.bf16.msra.mxu0 %v3794_v33  ;;  %2448 = vmatpush2.bf16.msra.mxu1 %v3881_v48  ;;  %v3874_v33 = vld [vmem:[#allocation10 + $0x18c] ss:$16 sps:$4 sm:$0xff]   ;;  %v3890_v48 = vld [vmem:[#allocation10 + $0x128] ss:$16 sps:$4 sm:$0xff]  }
 0x1cc   :  { %2408 = vmatprep.subr.bf16.mxu0 %v3799_v37  ;;  %2449 = vmatprep.subr.bf16.mxu1 %v3889_v50  ;;  %v3878_v37 = vld [vmem:[#allocation10 + $0x168] ss:$16 sps:$4 sm:$0xff]  }
 0x1cf   :  { %2409 = vmatpush2.bf16.msra.mxu0 %v3797_v38  ;;  %2450 = vmatpush2.bf16.msra.mxu1 %v3887_v52  ;;  %v3886_v38 = vld [vmem:[#allocation10 + $0x14c] ss:$16 sps:$4 sm:$0xff]  }
 0x1d0   :  { %2410 = vmatprep.subr.bf16.mxu0 %v3802_v41  ;;  %2451 = vmatprep.subr.bf16.mxu1 %v3895_v53  ;;  %v3892_v41 = vld [vmem:[#allocation10 + $0x12c] ss:$16 sps:$4 sm:$0xff]  }
 0x1d1   :  { %v3898_v52 = vld [vmem:[#allocation10 + $0x10c] ss:$16 sps:$4 sm:$0xff]  }
 0x1d3   :  { %2411 = vmatpush2.bf16.msra.mxu0 %v3800_v42  ;;  %2452 = vmatpush2.bf16.msra.mxu1 %v3893_v54  ;;  %v774_v42 = vrot.slane %v4298_v56, %v4284_v18 }
 0x1d4   :  { %2462 = vmatprep.subr.bf16.mxu0 %v3808_v47  ;;  %2503 = vmatprep.subr.bf16.mxu1 %v3901_v55 }
 0x216   :  { %v1453_v59 = vpop.f32.mrf.mxu0  ;;  %v1494_v43 = vpop.f32.mrf.mxu1 }
 0x217   :  { %v1454_v60 = vadd.f32 %v1453_v59, %v762_v57  ;;  %v3896_v59 = vld [vmem:[#allocation10 + $0x108] ss:$16 sps:$4 sm:$0xff]  }
 0x218   :  { %v1455_v36 = vpop.f32.mrf.mxu0  ;;  %v1496_v61 = vpop.f32.mrf.mxu1 }
 0x219   :  { %v1495_v62 = vadd.f32 %v1494_v43, %v1454_v60  ;;  %v1456_v63 = vadd.f32 %v1455_v36, %v766_v58 }
 0x21a   :  { %v1457_v0 = vpop.f32.mrf.mxu0  ;;  %v1498_v1 = vpop.f32.mrf.mxu1 }
 0x21b   :  { %v1497_v2 = vadd.f32 %v1496_v61, %v1456_v63  ;;  %v1583_v3 = vmax.f32 %v1495_v62, 0.0  ;;  %v3899_v62 = vld [vmem:[#allocation10 + $0x2e8] ss:$16 sps:$4 sm:$0xff]   ;;  %v3904_v0 = vld [vmem:[#allocation10 + $0x2cc] ss:$16 sps:$4 sm:$0xff]  }
 0x21c   :  { %v1458_v4 = vpop.f32.mrf.mxu0  ;;  %v1499_v5 = vpop.f32.mrf.mxu1  ;;  %v3902_v1 = vld [vmem:[#allocation10 + $0x2c8] ss:$16 sps:$4 sm:$0xff]  }
 0x21d   :  { %v1584_v6 = vmax.f32 %v1497_v2, 0.0  ;;  %v4304_v9 = vpack.c.bf16 %v1583_v3, %v1583_v3  ;;  %v3907_v2 = vld [vmem:[#allocation10 + $0x2ac] ss:$16 sps:$4 sm:$0xff]   ;;  %v3905_v3 = vld [vmem:[#allocation10 + $0x2a8] ss:$16 sps:$4 sm:$0xff]  }
 0x21e   :  { %v3910_v4 = vld [vmem:[#allocation10 + $0x28c] ss:$16 sps:$4 sm:$0xff]   ;;  %v3947_v5 = vld [vmem:[#allocation11 + $0x70] ss:$8 sps:$4 sm:$0xff]  }
 0x21f   :  { %v1588_v7 = vpack.c.bf16 %v1584_v6, %v1584_v6  ;;  %v3949_v6 = vld [vmem:[#allocation11 + $0x74] ss:$8 sps:$4 sm:$0xff]  }
 0x221   :  { %2412 = vmatprep.mubr.bf16.mxu0 %v1588_v7 }
 0x222   :  { %2413 = vmatmul.mubr.bf16.vlgmr.msra.gmra.mxu0 %v4304_v9 }
 0x223   :  { %2463 = vmatpush1.bf16.msra.mxu0 %v3806_v8  ;;  %2494 = vmatprep.mubr.bf16.mxu0 %v1588_v7  ;;  %v3952_v7 = vld [vmem:[#allocation11 + $0x64] ss:$8 sps:$4 sm:$0xff]   ;;  %v3908_v8 = vld [vmem:[#allocation10 + $0x288] ss:$16 sps:$4 sm:$0xff]  }
 0x224   :  { %2464 = vmatprep.subr.bf16.mxu0 %v3814_v10  ;;  %v3950_v10 = vld [vmem:[#allocation11 + $0x60] ss:$8 sps:$4 sm:$0xff]  }
 0x227   :  { %2465 = vmatpush1.bf16.msra.mxu0 %v3812_v11  ;;  %v3913_v11 = vld [vmem:[#allocation10 + $0x26c] ss:$16 sps:$4 sm:$0xff]  }
 0x228   :  { %2466 = vmatprep.subr.bf16.mxu0 %v3820_v12  ;;  %v3911_v12 = vld [vmem:[#allocation10 + $0x268] ss:$16 sps:$4 sm:$0xff]  }
 0x22b   :  { %2467 = vmatpush1.bf16.msra.mxu0 %v3818_v13  ;;  %v3953_v13 = vld [vmem:[#allocation11 + $0x50] ss:$8 sps:$4 sm:$0xff]  }
 0x22c   :  { %2468 = vmatprep.subr.bf16.mxu0 %v3826_v16  ;;  %v3916_v16 = vld [vmem:[#allocation10 + $0x24c] ss:$16 sps:$4 sm:$0xff]  }
 0x22f   :  { %2469 = vmatpush1.bf16.msra.mxu0 %v3824_v19  ;;  %v3958_v19 = vld [vmem:[#allocation11 + $0x44] ss:$8 sps:$4 sm:$0xff]  }
 0x230   :  { %2470 = vmatprep.subr.bf16.mxu0 %v3832_v20  ;;  %v3914_v20 = vld [vmem:[#allocation10 + $0x248] ss:$16 sps:$4 sm:$0xff]  }
 0x233   :  { %2471 = vmatpush1.bf16.msra.mxu0 %v3830_v21  ;;  %v3956_v21 = vld [vmem:[#allocation11 + $0x40] ss:$8 sps:$4 sm:$0xff]  }
 0x234   :  { %2472 = vmatprep.subr.bf16.mxu0 %v3838_v22  ;;  %v3919_v22 = vld [vmem:[#allocation10 + $0x22c] ss:$16 sps:$4 sm:$0xff]  }
 0x237   :  { %2473 = vmatpush1.bf16.msra.mxu0 %v3836_v23  ;;  %v3961_v23 = vld [vmem:[#allocation11 + $0x34] ss:$8 sps:$4 sm:$0xff]  }
 0x238   :  { %2474 = vmatprep.subr.bf16.mxu0 %v3844_v24  ;;  %v3917_v24 = vld [vmem:[#allocation10 + $0x228] ss:$16 sps:$4 sm:$0xff]  }
 0x23b   :  { %2475 = vmatpush1.bf16.msra.mxu0 %v3842_v25  ;;  %v3959_v25 = vld [vmem:[#allocation11 + $0x30] ss:$8 sps:$4 sm:$0xff]  }
 0x23c   :  { %2476 = vmatprep.subr.bf16.mxu0 %v3850_v26  ;;  %v3922_v26 = vld [vmem:[#allocation10 + $0x20c] ss:$16 sps:$4 sm:$0xff]  }
 0x23f   :  { %2477 = vmatpush1.bf16.msra.mxu0 %v3848_v27  ;;  %v3964_v27 = vld [vmem:[#allocation11 + $0x24] ss:$8 sps:$4 sm:$0xff]  }
 0x240   :  { %2478 = vmatprep.subr.bf16.mxu0 %v3856_v28  ;;  %v3920_v28 = vld [vmem:[#allocation10 + $0x208] ss:$16 sps:$4 sm:$0xff]  }
 0x243   :  { %2479 = vmatpush2.bf16.msra.mxu0 %v3854_v29  ;;  %v3962_v29 = vld [vmem:[#allocation11 + $0x20] ss:$8 sps:$4 sm:$0xff]  }
 0x244   :  { %2480 = vmatprep.subr.bf16.mxu0 %v3862_v30  ;;  %v3925_v30 = vld [vmem:[#allocation10 + $0x3ec] ss:$16 sps:$4 sm:$0xff]  }
 0x247   :  { %2481 = vmatpush2.bf16.msra.mxu0 %v3860_v31  ;;  %v3967_v31 = vld [vmem:[#allocation11 + $0x14] ss:$8 sps:$4 sm:$0xff]  }
 0x248   :  { %2482 = vmatprep.subr.bf16.mxu0 %v3868_v32  ;;  %v3923_v32 = vld [vmem:[#allocation10 + $0x3e8] ss:$16 sps:$4 sm:$0xff]  }
 0x24b   :  { %2483 = vmatpush2.bf16.msra.mxu0 %v3866_v45  ;;  %v3965_v45 = vld [vmem:[#allocation11 + $0x10] ss:$8 sps:$4 sm:$0xff]  }
 0x24c   :  { %2484 = vmatprep.subr.bf16.mxu0 %v3874_v33  ;;  %v3928_v33 = vld [vmem:[#allocation10 + $0x3cc] ss:$16 sps:$4 sm:$0xff]  }
 0x24f   :  { %2485 = vmatpush2.bf16.msra.mxu0 %v3872_v34  ;;  %v3970_v34 = vld [vmem:[#allocation11 + $0x4] ss:$8 sps:$4 sm:$0xff]  }
 0x250   :  { %2486 = vmatprep.subr.bf16.mxu0 %v3880_v35  ;;  %v3926_v35 = vld [vmem:[#allocation10 + $0x3c8] ss:$16 sps:$4 sm:$0xff]  }
 0x253   :  { %2487 = vmatpush2.bf16.msra.mxu0 %v3878_v37  ;;  %v3968_v37 = vld [vmem:[#allocation11] ss:$8 sps:$4 sm:$0xff]  }
 0x254   :  { %2488 = vmatprep.subr.bf16.mxu0 %v3886_v38  ;;  %v3931_v38 = vld [vmem:[#allocation10 + $0x3ac] ss:$16 sps:$4 sm:$0xff]  }
 0x256   :  { %v1535_v44 = vpop.f32.mrf.mxu0  ;;  %v1576_v46 = vpop.f32.mrf.mxu1 }
 0x257   :  { %v1536_v47 = vadd.f32 %v1535_v44, %v770_v39  ;;  %2489 = vmatpush2.bf16.msra.mxu0 %v3884_v40  ;;  %v3973_v39 = vld [vmem:[#allocation11 + $0xf4] ss:$8 sps:$4 sm:$0xff]   ;;  %v3929_v40 = vld [vmem:[#allocation10 + $0x3a8] ss:$16 sps:$4 sm:$0xff]   ;;  %v3976_v44 = vld [vmem:[#allocation11 + $0xe4] ss:$8 sps:$4 sm:$0xff]  }
 0x258   :  { %v1537_v49 = vpop.f32.mrf.mxu0  ;;  %v1578_v50 = vpop.f32.mrf.mxu1  ;;  %2490 = vmatprep.subr.bf16.mxu0 %v3892_v41  ;;  %v3971_v41 = vld [vmem:[#allocation11 + $0xf0] ss:$8 sps:$4 sm:$0xff]  }
 0x259   :  { %v1577_v53 = vadd.f32 %v1576_v46, %v1536_v47  ;;  %v1538_v54 = vadd.f32 %v1537_v49, %v774_v42  ;;  %v3934_v42 = vld [vmem:[#allocation10 + $0x38c] ss:$16 sps:$4 sm:$0xff]   ;;  %v3932_v46 = vld [vmem:[#allocation10 + $0x388] ss:$16 sps:$4 sm:$0xff]  }
 0x25a   :  { %v1539_v55 = vpop.f32.mrf.mxu0  ;;  %v1580_v57 = vpop.f32.mrf.mxu1  ;;  %v3974_v47 = vld [vmem:[#allocation11 + $0xe0] ss:$8 sps:$4 sm:$0xff]   ;;  %v3979_v49 = vld [vmem:[#allocation11 + $0xd4] ss:$8 sps:$4 sm:$0xff]  }
 0x25b   :  { %v1579_v58 = vadd.f32 %v1578_v50, %v1538_v54  ;;  %2491 = vmatpush2.bf16.msra.mxu0 %v3890_v48  ;;  %v1585_v43 = vmax.f32 %v1577_v53, 0.0  ;;  %v3937_v48 = vld [vmem:[#allocation10 + $0x36c] ss:$16 sps:$4 sm:$0xff]   ;;  %v3935_v50 = vld [vmem:[#allocation10 + $0x368] ss:$16 sps:$4 sm:$0xff]  }
 0x25c   :  { %v1540_v60 = vpop.f32.mrf.mxu0  ;;  %v1581_v36 = vpop.f32.mrf.mxu1  ;;  %2492 = vmatprep.subr.bf16.mxu0 %v3898_v52  ;;  %v3977_v52 = vld [vmem:[#allocation11 + $0xd0] ss:$8 sps:$4 sm:$0xff]   ;;  %v3940_v53 = vld [vmem:[#allocation10 + $0x34c] ss:$16 sps:$4 sm:$0xff]   ;;  %v3980_v57 = vld [vmem:[#allocation11 + $0xc0] ss:$8 sps:$4 sm:$0xff]  }
 0x25d   :  { %v1586_v56 = vmax.f32 %v1579_v58, 0.0  ;;  %v4311_v63 = vpack.c.bf16 %v1585_v43, %v1585_v43  ;;  %v3982_v54 = vld [vmem:[#allocation11 + $0xc4] ss:$8 sps:$4 sm:$0xff]   ;;  %v3938_v55 = vld [vmem:[#allocation10 + $0x348] ss:$16 sps:$4 sm:$0xff]  }
 0x25e   :  { %v3943_v58 = vld [vmem:[#allocation10 + $0x32c] ss:$16 sps:$4 sm:$0xff]   ;;  %v3941_v43 = vld [vmem:[#allocation10 + $0x328] ss:$16 sps:$4 sm:$0xff]  }
 0x25f   :  { %v1590_v61 = vpack.c.bf16 %v1586_v56, %v1586_v56  ;;  %2493 = vmatpush2.bf16.msra.mxu0 %v3896_v59  ;;  %v3985_v59 = vld [vmem:[#allocation11 + $0xb4] ss:$8 sps:$4 sm:$0xff]   ;;  %v3983_v60 = vld [vmem:[#allocation11 + $0xb0] ss:$8 sps:$4 sm:$0xff]   ;;  %v3988_v56 = vld [vmem:[#allocation11 + $0xa4] ss:$8 sps:$4 sm:$0xff]  }
 0x260   :  { %2947 = vmatprep.subr.bf16.mxu0 %v3949_v6  ;;  %v3946_v36 = vld [vmem:[#allocation10 + $0x30c] ss:$16 sps:$4 sm:$0xff]  }
 0x261   :  { %2453 = vmatprep.mubr.bf16.mxu1 %v1590_v61  ;;  %v4000_v6 = vld [vmem:[#allocation11 + $0x164] ss:$8 sps:$4 sm:$0xff]  }
 0x262   :  { %2454 = vmatmul.mubr.bf16.vlgmr.msra.gmra.mxu1 %v4311_v63  ;;  %2495 = vmatmul.mubr.bf16.vlgmr.msra.gmra.mxu0 %v4304_v9  ;;  %v3955_v9 = vld [vmem:[#allocation11 + $0x54] ss:$8 sps:$4 sm:$0xff]  }
 0x263   :  { %2504 = vmatpush1.bf16.msra.mxu1 %v3899_v62  ;;  %2535 = vmatprep.mubr.bf16.mxu1 %v1590_v61  ;;  %v3944_v61 = vld [vmem:[#allocation10 + $0x308] ss:$16 sps:$4 sm:$0xff]  }
 0x264   :  { %2505 = vmatprep.subr.bf16.mxu1 %v3904_v0  ;;  %2948 = vmatpush1.bf16.msra.mxu0 %v3947_v5  ;;  %v3986_v62 = vld [vmem:[#allocation11 + $0xa0] ss:$8 sps:$4 sm:$0xff]   ;;  %v3991_v0 = vld [vmem:[#allocation11 + $0x94] ss:$8 sps:$4 sm:$0xff]   ;;  %v3995_v5 = vld [vmem:[#allocation11 + $0x170] ss:$8 sps:$4 sm:$0xff]  }
 0x265   :  { %2949 = vmatprep.subr.bf16.mxu0 %v3952_v7  ;;  %v3998_v7 = vld [vmem:[#allocation11 + $0x160] ss:$8 sps:$4 sm:$0xff]  }
 0x267   :  { %2506 = vmatpush1.bf16.msra.mxu1 %v3902_v1  ;;  %v3989_v1 = vld [vmem:[#allocation11 + $0x90] ss:$8 sps:$4 sm:$0xff]  }
 0x268   :  { %2507 = vmatprep.subr.bf16.mxu1 %v3907_v2  ;;  %2950 = vmatpush1.bf16.msra.mxu0 %v3950_v10  ;;  %v3994_v2 = vld [vmem:[#allocation11 + $0x84] ss:$8 sps:$4 sm:$0xff]   ;;  %v4001_v10 = vld [vmem:[#allocation11 + $0x150] ss:$8 sps:$4 sm:$0xff]  }
 0x269   :  { %2951 = vmatprep.subr.bf16.mxu0 %v3955_v9  ;;  %v4009_v9 = vld [vmem:[#allocation11 + $0x134] ss:$8 sps:$4 sm:$0xff]  }
 0x26b   :  { %2508 = vmatpush1.bf16.msra.mxu1 %v3905_v3  ;;  %v3992_v3 = vld [vmem:[#allocation11 + $0x80] ss:$8 sps:$4 sm:$0xff]  }
 0x26c   :  { %2509 = vmatprep.subr.bf16.mxu1 %v3910_v4  ;;  %2952 = vmatpush1.bf16.msra.mxu0 %v3953_v13  ;;  %v3997_v4 = vld [vmem:[#allocation11 + $0x174] ss:$8 sps:$4 sm:$0xff]   ;;  %v4012_v13 = vld [vmem:[#allocation11 + $0x124] ss:$8 sps:$4 sm:$0xff]  }
 0x26d   :  { %2953 = vmatprep.subr.bf16.mxu0 %v3958_v19  ;;  %v4015_v19 = vld [vmem:[#allocation11 + $0x114] ss:$8 sps:$4 sm:$0xff]  }
 0x26f   :  { %2510 = vmatpush1.bf16.msra.mxu1 %v3908_v8  ;;  %v4003_v8 = vld [vmem:[#allocation11 + $0x154] ss:$8 sps:$4 sm:$0xff]  }
 0x270   :  { %2511 = vmatprep.subr.bf16.mxu1 %v3913_v11  ;;  %2954 = vmatpush1.bf16.msra.mxu0 %v3956_v21  ;;  %v4004_v11 = vld [vmem:[#allocation11 + $0x140] ss:$8 sps:$4 sm:$0xff]   ;;  %v4018_v21 = vld [vmem:[#allocation11 + $0x104] ss:$8 sps:$4 sm:$0xff]  }
 0x271   :  { %2955 = vmatprep.subr.bf16.mxu0 %v3961_v23  ;;  %v4021_v23 = vld [vmem:[#allocation11 + $0x1f4] ss:$8 sps:$4 sm:$0xff]  }
 0x273   :  { %2512 = vmatpush1.bf16.msra.mxu1 %v3911_v12  ;;  %v4007_v12 = vld [vmem:[#allocation11 + $0x130] ss:$8 sps:$4 sm:$0xff]  }
 0x274   :  { %2513 = vmatprep.subr.bf16.mxu1 %v3916_v16  ;;  %2956 = vmatpush1.bf16.msra.mxu0 %v3959_v25  ;;  %v4010_v16 = vld [vmem:[#allocation11 + $0x120] ss:$8 sps:$4 sm:$0xff]   ;;  %v4024_v25 = vld [vmem:[#allocation11 + $0x1e4] ss:$8 sps:$4 sm:$0xff]  }
 0x275   :  { %2957 = vmatprep.subr.bf16.mxu0 %v3964_v27  ;;  %v4027_v27 = vld [vmem:[#allocation11 + $0x1d4] ss:$8 sps:$4 sm:$0xff]  }
 0x277   :  { %2514 = vmatpush1.bf16.msra.mxu1 %v3914_v20  ;;  %v4013_v20 = vld [vmem:[#allocation11 + $0x110] ss:$8 sps:$4 sm:$0xff]  }
 0x278   :  { %2515 = vmatprep.subr.bf16.mxu1 %v3919_v22  ;;  %2958 = vmatpush1.bf16.msra.mxu0 %v3962_v29  ;;  %v4016_v22 = vld [vmem:[#allocation11 + $0x100] ss:$8 sps:$4 sm:$0xff]   ;;  %v4030_v29 = vld [vmem:[#allocation11 + $0x1c4] ss:$8 sps:$4 sm:$0xff]  }
 0x279   :  { %2959 = vmatprep.subr.bf16.mxu0 %v3967_v31  ;;  %v4033_v31 = vld [vmem:[#allocation11 + $0x1b4] ss:$8 sps:$4 sm:$0xff]  }
 0x27b   :  { %2516 = vmatpush1.bf16.msra.mxu1 %v3917_v24  ;;  %v4019_v24 = vld [vmem:[#allocation11 + $0x1f0] ss:$8 sps:$4 sm:$0xff]  }
 0x27c   :  { %2517 = vmatprep.subr.bf16.mxu1 %v3922_v26  ;;  %2960 = vmatpush1.bf16.msra.mxu0 %v3965_v45  ;;  %v4022_v26 = vld [vmem:[#allocation11 + $0x1e0] ss:$8 sps:$4 sm:$0xff]   ;;  %v4036_v45 = vld [vmem:[#allocation11 + $0x1a4] ss:$8 sps:$4 sm:$0xff]  }
 0x27d   :  { %2961 = vmatprep.subr.bf16.mxu0 %v3970_v34 }
 0x27f   :  { %2518 = vmatpush1.bf16.msra.mxu1 %v3920_v28  ;;  %v4025_v28 = vld [vmem:[#allocation11 + $0x1d0] ss:$8 sps:$4 sm:$0xff]  }
 0x280   :  { %2519 = vmatprep.subr.bf16.mxu1 %v3925_v30  ;;  %2962 = vmatpush1.bf16.msra.mxu0 %v3968_v37  ;;  %v4028_v30 = vld [vmem:[#allocation11 + $0x1c0] ss:$8 sps:$4 sm:$0xff]   ;;  %v4037_v37 = vld [vmem:[#allocation11 + $0x190] ss:$8 sps:$4 sm:$0xff]  }
 0x281   :  { %2963 = vmatprep.subr.bf16.mxu0 %v3973_v39 }
 0x283   :  { %2520 = vmatpush2.bf16.msra.mxu1 %v3923_v32  ;;  %v4031_v32 = vld [vmem:[#allocation11 + $0x1b0] ss:$8 sps:$4 sm:$0xff]  }
 0x284   :  { %2521 = vmatprep.subr.bf16.mxu1 %v3928_v33  ;;  %2964 = vmatpush2.bf16.msra.mxu0 %v3971_v41  ;;  %v4034_v33 = vld [vmem:[#allocation11 + $0x1a0] ss:$8 sps:$4 sm:$0xff]  }
 0x285   :  { %2965 = vmatprep.subr.bf16.mxu0 %v3976_v44  ;;  %v4040_v41 = vld [vmem:[#allocation11 + $0x180] ss:$8 sps:$4 sm:$0xff]   ;;  %v106_v44 = vld [vmem:[#allocation7 + $0x2] ss:$4 sm:$0xf] }
 0x287   :  { %2522 = vmatpush2.bf16.msra.mxu1 %v3926_v35  ;;  %v4039_v35 = vld [vmem:[#allocation11 + $0x194] ss:$8 sps:$4 sm:$0xff]  }
 0x288   :  { %2523 = vmatprep.subr.bf16.mxu1 %v3931_v38  ;;  %2966 = vmatpush2.bf16.msra.mxu0 %v3974_v47  ;;  %v1727_v47 = vrot.slane %v106_v44, %v4281_v17 }
 0x289   :  { %2967 = vmatprep.subr.bf16.mxu0 %v3979_v49 }
 0x28b   :  { %2524 = vmatpush2.bf16.msra.mxu1 %v3929_v40  ;;  %v4042_v40 = vld [vmem:[#allocation11 + $0x184] ss:$8 sps:$4 sm:$0xff]  }
 0x28c   :  { %2525 = vmatprep.subr.bf16.mxu1 %v3934_v42  ;;  %2968 = vmatpush2.bf16.msra.mxu0 %v3977_v52 }
 0x28d   :  { %2969 = vmatprep.subr.bf16.mxu0 %v3982_v54 }
 0x28f   :  { %2526 = vmatpush2.bf16.msra.mxu1 %v3932_v46  ;;  %v1723_v46 = vrot.slane %v106_v44, %v4275_v14 }
 0x290   :  { %2527 = vmatprep.subr.bf16.mxu1 %v3937_v48  ;;  %2970 = vmatpush2.bf16.msra.mxu0 %v3980_v57 }
 0x291   :  { %2971 = vmatprep.subr.bf16.mxu0 %v3985_v59 }
 0x293   :  { %2528 = vmatpush2.bf16.msra.mxu1 %v3935_v50 }
 0x294   :  { %2529 = vmatprep.subr.bf16.mxu1 %v3940_v53  ;;  %2972 = vmatpush2.bf16.msra.mxu0 %v3983_v60 }
 0x295   :  { %2973 = vmatprep.subr.bf16.mxu0 %v3988_v56 }
 0x297   :  { %2530 = vmatpush2.bf16.msra.mxu1 %v3938_v55 }
 0x298   :  { %2531 = vmatprep.subr.bf16.mxu1 %v3943_v58  ;;  %2974 = vmatpush2.bf16.msra.mxu0 %v3986_v62 }
 0x299   :  { %2975 = vmatprep.subr.bf16.mxu0 %v3991_v0  ;;  %v1731_v0 = vrot.slane %v106_v44, %v4278_v15 }
 0x29b   :  { %2532 = vmatpush2.bf16.msra.mxu1 %v3941_v43 }
 0x29c   :  { %2533 = vmatprep.subr.bf16.mxu1 %v3946_v36  ;;  %2976 = vmatpush2.bf16.msra.mxu0 %v3989_v1  ;;  %v1735_v1 = vrot.slane %v106_v44, %v4284_v18 }
 0x29d   :  { %2977 = vmatprep.subr.bf16.mxu0 %v3994_v2 }
 0x29f   :  { %2534 = vmatpush2.bf16.msra.mxu1 %v3944_v61 }
 0x2a0   :  { %2978 = vmatpush2.bf16.msra.mxu0 %v3992_v3  ;;  %2988 = vmatprep.subr.bf16.mxu1 %v3997_v4 }
 0x2a2   :  { %2536 = vmatmul.mubr.bf16.vlgmr.msra.gmra.mxu1 %v4311_v63  ;;  %v4006_v63 = vld [vmem:[#allocation11 + $0x144] ss:$8 sps:$4 sm:$0xff]  }
 0x2a3   :  { %2989 = vmatpush1.bf16.msra.mxu1 %v3995_v5 }
 0x2a4   :  { %2990 = vmatprep.subr.bf16.mxu1 %v4000_v6 }
 0x2a7   :  { %2991 = vmatpush1.bf16.msra.mxu1 %v3998_v7 }
 0x2a8   :  { %2992 = vmatprep.subr.bf16.mxu1 %v4003_v8 }
 0x2ab   :  { %2993 = vmatpush1.bf16.msra.mxu1 %v4001_v10 }
 0x2ac   :  { %2994 = vmatprep.subr.bf16.mxu1 %v4006_v63 }
 0x2af   :  { %2995 = vmatpush1.bf16.msra.mxu1 %v4004_v11 }
 0x2b0   :  { %2996 = vmatprep.subr.bf16.mxu1 %v4009_v9 }
 0x2b3   :  { %2997 = vmatpush1.bf16.msra.mxu1 %v4007_v12 }
 0x2b4   :  { %2998 = vmatprep.subr.bf16.mxu1 %v4012_v13 }
 0x2b7   :  { %2999 = vmatpush1.bf16.msra.mxu1 %v4010_v16 }
 0x2b8   :  { %3000 = vmatprep.subr.bf16.mxu1 %v4015_v19 }
 0x2bb   :  { %3001 = vmatpush1.bf16.msra.mxu1 %v4013_v20  ;;  %v108_v20 = vld [vmem:[#allocation7 + $0x3] ss:$4 sm:$0x3] }
 0x2bc   :  { %3002 = vmatprep.subr.bf16.mxu1 %v4018_v21  ;;  %v2620_v18 = vrot.slane %v108_v20, %v4275_v14  ;;  %v2624_v21 = vrot.slane %v108_v20, %v4281_v17 }
 0x2bf   :  { %3003 = vmatpush1.bf16.msra.mxu1 %v4016_v22 }
 0x2c0   :  { %3004 = vmatprep.subr.bf16.mxu1 %v4021_v23 }
 0x2c3   :  { %3005 = vmatpush2.bf16.msra.mxu1 %v4019_v24 }
 0x2c4   :  { %3006 = vmatprep.subr.bf16.mxu1 %v4024_v25 }
 0x2c7   :  { %3007 = vmatpush2.bf16.msra.mxu1 %v4022_v26 }
 0x2c8   :  { %3008 = vmatprep.subr.bf16.mxu1 %v4027_v27 }
 0x2cb   :  { %3009 = vmatpush2.bf16.msra.mxu1 %v4025_v28 }
 0x2cc   :  { %3010 = vmatprep.subr.bf16.mxu1 %v4030_v29 }
 0x2cf   :  { %3011 = vmatpush2.bf16.msra.mxu1 %v4028_v30 }
 0x2d0   :  { %3012 = vmatprep.subr.bf16.mxu1 %v4033_v31 }
 0x2d3   :  { %3013 = vmatpush2.bf16.msra.mxu1 %v4031_v32 }
 0x2d4   :  { %3014 = vmatprep.subr.bf16.mxu1 %v4036_v45 }
 0x2d7   :  { %3015 = vmatpush2.bf16.msra.mxu1 %v4034_v33 }
 0x2d8   :  { %3016 = vmatprep.subr.bf16.mxu1 %v4039_v35 }
 0x2db   :  { %3017 = vmatpush2.bf16.msra.mxu1 %v4037_v37 }
 0x2dc   :  { %3018 = vmatprep.subr.bf16.mxu1 %v4042_v40 }
 0x2df   :  { %3019 = vmatpush2.bf16.msra.mxu1 %v4040_v41 }
 0x2e2   :  { %v2414_v34 = vpop.f32.mrf.mxu0 }
 0x2e3   :  { %v2415_v48 = vadd.f32 %v2414_v34, %v1723_v46 }
 0x2e4   :  { %v2416_v38 = vpop.f32.mrf.mxu0 }
 0x2e5   :  { %v2417_v52 = vadd.f32 %v2416_v38, %v1727_v47 }
 0x2e6   :  { %v2418_v39 = vpop.f32.mrf.mxu0 }
 0x2e8   :  { %v2419_v42 = vpop.f32.mrf.mxu0 }
 0x322   :  { %v2455_v49 = vpop.f32.mrf.mxu1  ;;  %v2496_v50 = vpop.f32.mrf.mxu0 }
 0x323   :  { %v2456_v53 = vadd.f32 %v2455_v49, %v2415_v48  ;;  %v2497_v2 = vadd.f32 %v2496_v50, %v1731_v0 }
 0x324   :  { %v2457_v54 = vpop.f32.mrf.mxu1  ;;  %v2498_v55 = vpop.f32.mrf.mxu0 }
 0x325   :  { %v2458_v57 = vadd.f32 %v2457_v54, %v2417_v52  ;;  %v2544_v58 = vmax.f32 %v2456_v53, 0.0  ;;  %v2499_v4 = vadd.f32 %v2498_v55, %v1735_v1 }
 0x326   :  { %v2459_v59 = vpop.f32.mrf.mxu1  ;;  %v2500_v43 = vpop.f32.mrf.mxu0 }
 0x327   :  { %v2545_v60 = vmax.f32 %v2458_v57, 0.0  ;;  %v2548_v62 = vpack.c.bf16 %v2544_v58, %v2544_v58 }
 0x328   :  { %v2460_v36 = vpop.f32.mrf.mxu1  ;;  %v2501_v56 = vpop.f32.mrf.mxu0 }
 0x329   :  { %v2549_v61 = vpack.c.bf16 %v2545_v60, %v2545_v60 }
 0x32b   :  { %2979 = vmatprep.mubr.bf16.mxu0 %v2549_v61 }
 0x32c   :  { %2980 = vmatmul.mubr.bf16.vlgmr.msra.gmra.mxu0 %v2548_v62 }
 0x362   :  { %v2537_v3 = vpop.f32.mrf.mxu1 }
 0x363   :  { %v2538_v5 = vadd.f32 %v2537_v3, %v2497_v2 }
 0x364   :  { %v2539_v6 = vpop.f32.mrf.mxu1 }
 0x365   :  { %v2540_v7 = vadd.f32 %v2539_v6, %v2499_v4  ;;  %v2546_v8 = vmax.f32 %v2538_v5, 0.0 }
 0x366   :  { %v2541_v10 = vpop.f32.mrf.mxu1 }
 0x367   :  { %v2547_v63 = vmax.f32 %v2540_v7, 0.0  ;;  %v2550_v12 = vpack.c.bf16 %v2546_v8, %v2546_v8 }
 0x368   :  { %v2542_v11 = vpop.f32.mrf.mxu1 }
 0x369   :  { %v2551_v9 = vpack.c.bf16 %v2547_v63, %v2547_v63 }
 0x36b   :  { %3020 = vmatprep.mubr.bf16.mxu1 %v2551_v9 }
 0x36c   :  { %3021 = vmatmul.mubr.bf16.vlgmr.msra.gmra.mxu1 %v2550_v12 }
 0x3ec   :  { %v2981_v13 = vpop.f32.mrf.mxu0 }
 0x3ed   :  { %v2982_v23 = vadd.f32 %v2981_v13, %v2620_v18 }
 0x3ee   :  { %v2983_v16 = vpop.f32.mrf.mxu0 }
 0x3ef   :  { %v2984_v24 = vadd.f32 %v2983_v16, %v2624_v21 }
 0x3f0   :  { %v2985_v19 = vpop.f32.mrf.mxu0 }
 0x3f2   :  { %v2986_v15 = vpop.f32.mrf.mxu0 }
 0x42c   :  { %v3022_v22 = vpop.f32.mrf.mxu1 }
 0x42d   :  { %v3023_v26 = vadd.f32 %v3022_v22, %v2982_v23 }
 0x42e   :  { %v3024_v25 = vpop.f32.mrf.mxu1 }
 0x42f   :  { %v3025_v27 = vadd.f32 %v3024_v25, %v2984_v24 }
 0x430   :  { %v3026_v28 = vpop.f32.mrf.mxu1 }
 0x431   :  { %v3453_v29 = vpack.c.bf16 %v3025_v27, %v3023_v26 }
 0x432   :  { %v3027_v30 = vpop.f32.mrf.mxu1 }
 0x433   :  { %v3040_v31 = vrot.slane %v3453_v29, %v4270_v51 }
 0x435   :  { %3454 = vst.sshfl [vmem:[#allocation13] sm:$0x5 pattern:$0x73625140] %v3040_v31 }
 0x436   :  { %4174 = shalt.err (!%p4171_p6)
}
 0x437   :  { %3059 = dma.vmem_to_hbm [thread:$0]  %s3057_s5, 32, %s4332_s6, [#allocation4]  }
 0x438   :  { %4191 = dma.done.wait [#allocation4], 32  }
 0x439   :  { %4192 = vsyncadd [#allocation4], 4294967264 }
 0x43a   :  { %3063 = vsyncpa [#allocation3], 1 }
 0x43b   :  { %3064 = vsyncpa [#allocation6], 1 }
 0x43c   :  { %3065 = vsyncpa [#allocation9], 1 }
 0x43d   :  { %3066 = vsyncpa [#allocation12], 1 }
 0x43e   :  { %3067 = vsyncpa [#allocation4], 1 }

</bundles_post_ra>
